<compile_context>
chip_gen: v6e
topology: v6e:2x2x1
jax: 0.10.0
libtpu: 0.0.40
codegen_flags: <defaults>
</compile_context>

<pallas_src>
import functools

import jax
import jax.numpy as jnp
from jax.experimental import pallas as pl
from jax.experimental.pallas import tpu as pltpu  # noqa: F401  (kept for TPU params if scaled up)


# ----------------------------------------------------------------------------
# Fused kernel: all LSTM layers (PyTorch gate order i, f, g, o) + Linear head.
#
# refs layout (after x_ref):
#   [w_ih_t_0, w_hh_t_0, b_0, ..., w_ih_t_{L-1}, w_hh_t_{L-1}, b_{L-1},
#    fc_w_t, fc_b, out_ref]
# Weights are pre-transposed so every matmul is row-major `x @ W`.
# ----------------------------------------------------------------------------
def fused_rnn_kernel(num_layers, x_ref, *refs):
    out_ref = refs[-1]
    fc_w_ref = refs[3 * num_layers]
    fc_b_ref = refs[3 * num_layers + 1]

    T, B, _ = x_ref.shape
    H = refs[1].shape[0]            # w_hh_t is (H, 4H)

    xs = None                       # per-timestep inputs for layers > 0
    h = None
    for layer in range(num_layers):
        w_ih = refs[3 * layer][...]        # (in, 4H) — loaded once per layer
        w_hh = refs[3 * layer + 1][...]    # (H, 4H)
        # Hoist the (1,4H)->(B,4H) broadcast out of the unrolled time loop.
        bias = jnp.broadcast_to(refs[3 * layer + 2][...], (B, 4 * H))

        h = jnp.zeros((B, H), jnp.float32)
        c = jnp.zeros((B, H), jnp.float32)
        last_layer = layer == num_layers - 1
        outs = []
        for t in range(T):
            x_t = x_ref[t] if layer == 0 else xs[t]          # (B, in)
            gates = (
                jnp.dot(x_t, w_ih, preferred_element_type=jnp.float32)
                + jnp.dot(h, w_hh, preferred_element_type=jnp.float32)
                + bias
            )                                                 # (B, 4H)
            i_g = jax.nn.sigmoid(gates[:, 0 * H:1 * H])
            f_g = jax.nn.sigmoid(gates[:, 1 * H:2 * H])
            g_g = jnp.tanh(gates[:, 2 * H:3 * H])
            o_g = jax.nn.sigmoid(gates[:, 3 * H:4 * H])
            c = f_g * c + i_g * g_g
            h = o_g * jnp.tanh(c)
            if not last_layer:
                outs.append(h)       # feeds the next layer, stays on-chip
        if not last_layer:
            xs = outs

    # FC head on the last layer's final hidden state only — the one HBM write.
    out_ref[...] = (
        jnp.dot(h, fc_w_ref[...], preferred_element_type=jnp.float32)
        + fc_b_ref[...]
    )


# ----------------------------------------------------------------------------
# Wrapper: one pallas_call, no grid, every operand resident in VMEM.
# ----------------------------------------------------------------------------
def rnn_forward(x_bt, params):
    """x_bt: (B, T, input_size) batch-first, like the PyTorch module."""
    x_tm = jnp.transpose(x_bt.astype(jnp.float32), (1, 0, 2))   # (T, B, F)
    T, B, F = x_tm.shape
    num_layers = len(params["lstm"])
    C = params["fc_w_t"].shape[1]

    inputs = [x_tm]
    in_specs = [pl.BlockSpec((T, B, F), lambda: (0, 0, 0))]
    for (w_ih_t, w_hh_t, bias) in params["lstm"]:
        inputs += [w_ih_t, w_hh_t, bias]
        in_specs += [
            pl.BlockSpec(w_ih_t.shape, lambda: (0, 0)),
            pl.BlockSpec(w_hh_t.shape, lambda: (0, 0)),
            pl.BlockSpec(bias.shape, lambda: (0, 0)),
        ]
    inputs += [params["fc_w_t"], params["fc_b"]]
    in_specs += [
        pl.BlockSpec(params["fc_w_t"].shape, lambda: (0, 0)),
        pl.BlockSpec(params["fc_b"].shape, lambda: (0, 0)),
    ]

    return pl.pallas_call(
        functools.partial(fused_rnn_kernel, num_layers),
        out_shape=jax.ShapeDtypeStruct((B, C), jnp.float32),
        in_specs=in_specs,
        out_specs=pl.BlockSpec((B, C), lambda: (0, 0)),
    )(*inputs)


# ----------------------------------------------------------------------------
# Pure-JAX reference (same math, for a correctness sanity check).
# ----------------------------------------------------------------------------
def rnn_reference(x_bt, params):
    x = x_bt.astype(jnp.float32)
    B, T, _ = x.shape
    for (w_ih_t, w_hh_t, bias) in params["lstm"]:
        H = w_hh_t.shape[0]
        h = jnp.zeros((B, H), jnp.float32)
        c = jnp.zeros((B, H), jnp.float32)
        outs = []
        for t in range(T):
            gates = x[:, t, :] @ w_ih_t + h @ w_hh_t + bias
            i_g = jax.nn.sigmoid(gates[:, 0 * H:1 * H])
            f_g = jax.nn.sigmoid(gates[:, 1 * H:2 * H])
            g_g = jnp.tanh(gates[:, 2 * H:3 * H])
            o_g = jax.nn.sigmoid(gates[:, 3 * H:4 * H])
            c = f_g * c + i_g * g_g
            h = o_g * jnp.tanh(c)
            outs.append(h)
        x = jnp.stack(outs, axis=1)
    return x[:, -1, :] @ params["fc_w_t"] + params["fc_b"]


# ----------------------------------------------------------------------------
# Deterministic parameter init (PyTorch LSTM/Linear shapes, uniform(-k, k)),
# stored pre-transposed for the kernel: (in,4H), (H,4H), (1,4H), (H,C), (1,C).
# ----------------------------------------------------------------------------
def init_params(key, input_size, hidden_size, num_layers, num_classes):
    params = {"lstm": []}
    k = 1.0 / jnp.sqrt(hidden_size)
    for layer in range(num_layers):
        in_f = input_size if layer == 0 else hidden_size
        key, k1, k2, k3, k4 = jax.random.split(key, 5)
        w_ih = jax.random.uniform(k1, (4 * hidden_size, in_f), jnp.float32, -k, k)
        w_hh = jax.random.uniform(k2, (4 * hidden_size, hidden_size), jnp.float32, -k, k)
        b_ih = jax.random.uniform(k3, (4 * hidden_size,), jnp.float32, -k, k)
        b_hh = jax.random.uniform(k4, (4 * hidden_size,), jnp.float32, -k, k)
        params["lstm"].append(
            (w_ih.T, w_hh.T, (b_ih + b_hh).reshape(1, 4 * hidden_size))
        )
    key, k5, k6 = jax.random.split(key, 3)
    kf = 1.0 / jnp.sqrt(hidden_size)
    fc_w = jax.random.uniform(k5, (num_classes, hidden_size), jnp.float32, -kf, kf)
    fc_b = jax.random.uniform(k6, (num_classes,), jnp.float32, -kf, kf)
    params["fc_w_t"] = fc_w.T
    params["fc_b"] = fc_b.reshape(1, num_classes)
    return params


if __name__ == "__main__":
    B, T = 2, 8            # batch, sequence length
    INPUT_SIZE = 12        # e.g. MFCC feature dim
    HIDDEN = 32
    NUM_LAYERS = 2
    NUM_CLASSES = 5

    key = jax.random.PRNGKey(0)
    key, pkey, xkey = jax.random.split(key, 3)
    params = init_params(pkey, INPUT_SIZE, HIDDEN, NUM_LAYERS, NUM_CLASSES)
    x = jax.random.normal(xkey, (B, T, INPUT_SIZE), jnp.float32)

    out = jax.jit(rnn_forward)(x, params)
    out = jax.block_until_ready(out)
    assert out.shape == (B, NUM_CLASSES)
    assert jnp.all(jnp.isfinite(out))

    # Sanity check against a pure-JAX reference (tolerance covers possible
    # f32-matmul precision-mode differences between Mosaic and XLA).
    ref = rnn_reference(x, params)
    assert jnp.allclose(out, ref, atol=2e-2, rtol=2e-2), (out, ref)

    print("KERNEL_OK")
</pallas_src>

<mosaic_0001>
module attributes {stable_mosaic.version = 11 : i64} {
  func.func @fused_rnn_kernel(%arg0: memref<8x2x12xf32, #tpu.memory_space<vmem>>, %arg1: memref<12x128xf32, #tpu.memory_space<vmem>>, %arg2: memref<32x128xf32, #tpu.memory_space<vmem>>, %arg3: memref<1x128xf32, #tpu.memory_space<vmem>>, %arg4: memref<32x128xf32, #tpu.memory_space<vmem>>, %arg5: memref<32x128xf32, #tpu.memory_space<vmem>>, %arg6: memref<1x128xf32, #tpu.memory_space<vmem>>, %arg7: memref<32x5xf32, #tpu.memory_space<vmem>>, %arg8: memref<1x5xf32, #tpu.memory_space<vmem>>, %arg9: memref<2x5xf32, #tpu.memory_space<vmem>>) attributes {dimension_semantics = [], scalar_prefetch = 0 : i64, scratch_operands = 0 : i64, tpu.core_type = #tpu.core_type<tc>} {
    %c0 = arith.constant 0 : index
    %c0_0 = arith.constant 0 : index
    %0 = vector.load %arg1[%c0, %c0_0] : memref<12x128xf32, #tpu.memory_space<vmem>>, vector<12x128xf32>
    %c0_1 = arith.constant 0 : index
    %c0_2 = arith.constant 0 : index
    %1 = vector.load %arg2[%c0_1, %c0_2] : memref<32x128xf32, #tpu.memory_space<vmem>>, vector<32x128xf32>
    %c0_3 = arith.constant 0 : index
    %c0_4 = arith.constant 0 : index
    %2 = vector.load %arg3[%c0_3, %c0_4] : memref<1x128xf32, #tpu.memory_space<vmem>>, vector<1x128xf32>
    %3 = vector.shape_cast %2 : vector<1x128xf32> to vector<1x128xf32>
    %4 = vector.broadcast %3 : vector<1x128xf32> to vector<2x128xf32>
    %cst = arith.constant 0.000000e+00 : f32
    %5 = vector.broadcast %cst : f32 to vector<2x32xf32>
    %cst_5 = arith.constant 0.000000e+00 : f32
    %6 = vector.broadcast %cst_5 : f32 to vector<2x32xf32>
    %c0_6 = arith.constant 0 : index
    %c0_7 = arith.constant 0 : index
    %c0_8 = arith.constant 0 : index
    %7 = vector.load %arg0[%c0_6, %c0_7, %c0_8] : memref<8x2x12xf32, #tpu.memory_space<vmem>>, vector<1x2x12xf32>
    %8 = vector.shape_cast %7 : vector<1x2x12xf32> to vector<2x12xf32>
    %cst_9 = arith.constant dense<0.000000e+00> : vector<2x128xf32>
    %9 = tpu.matmul %8, %0, %cst_9 {dimension_numbers = #tpu.dot_dimension_numbers<[1], [0], [0], [1], [0, 0, 1, 1], [], []>} : vector<2x12xf32>, vector<12x128xf32>, vector<2x128xf32> -> vector<2x128xf32>
    %cst_10 = arith.constant dense<0.000000e+00> : vector<2x128xf32>
    %10 = tpu.matmul %5, %1, %cst_10 {dimension_numbers = #tpu.dot_dimension_numbers<[1], [0], [0], [1], [0, 0, 1, 1], [], []>} : vector<2x32xf32>, vector<32x128xf32>, vector<2x128xf32> -> vector<2x128xf32>
    %11 = arith.addf %9, %10 : vector<2x128xf32>
    %12 = arith.addf %11, %4 : vector<2x128xf32>
    %13 = vector.extract_strided_slice %12 {offsets = [0, 0], sizes = [2, 32], strides = [1, 1]} : vector<2x128xf32> to vector<2x32xf32>
    %14 = arith.negf %13 : vector<2x32xf32>
    %15 = math.exp %14 : vector<2x32xf32>
    %cst_11 = arith.constant 1.000000e+00 : f32
    %16 = vector.broadcast %cst_11 : f32 to vector<2x32xf32>
    %17 = arith.addf %16, %15 : vector<2x32xf32>
    %18 = arith.divf %16, %17 : vector<2x32xf32>
    %19 = vector.extract_strided_slice %12 {offsets = [0, 32], sizes = [2, 32], strides = [1, 1]} : vector<2x128xf32> to vector<2x32xf32>
    %20 = arith.negf %19 : vector<2x32xf32>
    %21 = math.exp %20 : vector<2x32xf32>
    %cst_12 = arith.constant 1.000000e+00 : f32
    %22 = vector.broadcast %cst_12 : f32 to vector<2x32xf32>
    %23 = arith.addf %22, %21 : vector<2x32xf32>
    %24 = arith.divf %22, %23 : vector<2x32xf32>
    %25 = vector.extract_strided_slice %12 {offsets = [0, 64], sizes = [2, 32], strides = [1, 1]} : vector<2x128xf32> to vector<2x32xf32>
    %26 = math.tanh %25 : vector<2x32xf32>
    %27 = vector.extract_strided_slice %12 {offsets = [0, 96], sizes = [2, 32], strides = [1, 1]} : vector<2x128xf32> to vector<2x32xf32>
    %28 = arith.negf %27 : vector<2x32xf32>
    %29 = math.exp %28 : vector<2x32xf32>
    %cst_13 = arith.constant 1.000000e+00 : f32
    %30 = vector.broadcast %cst_13 : f32 to vector<2x32xf32>
    %31 = arith.addf %30, %29 : vector<2x32xf32>
    %32 = arith.divf %30, %31 : vector<2x32xf32>
    %33 = arith.mulf %24, %6 : vector<2x32xf32>
    %34 = arith.mulf %18, %26 : vector<2x32xf32>
    %35 = arith.addf %33, %34 : vector<2x32xf32>
    %36 = math.tanh %35 : vector<2x32xf32>
    %37 = arith.mulf %32, %36 : vector<2x32xf32>
    %c1 = arith.constant 1 : index
    %c0_14 = arith.constant 0 : index
    %c0_15 = arith.constant 0 : index
    %38 = vector.load %arg0[%c1, %c0_14, %c0_15] : memref<8x2x12xf32, #tpu.memory_space<vmem>>, vector<1x2x12xf32>
    %39 = vector.shape_cast %38 : vector<1x2x12xf32> to vector<2x12xf32>
    %cst_16 = arith.constant dense<0.000000e+00> : vector<2x128xf32>
    %40 = tpu.matmul %39, %0, %cst_16 {dimension_numbers = #tpu.dot_dimension_numbers<[1], [0], [0], [1], [0, 0, 1, 1], [], []>} : vector<2x12xf32>, vector<12x128xf32>, vector<2x128xf32> -> vector<2x128xf32>
    %cst_17 = arith.constant dense<0.000000e+00> : vector<2x128xf32>
    %41 = tpu.matmul %37, %1, %cst_17 {dimension_numbers = #tpu.dot_dimension_numbers<[1], [0], [0], [1], [0, 0, 1, 1], [], []>} : vector<2x32xf32>, vector<32x128xf32>, vector<2x128xf32> -> vector<2x128xf32>
    %42 = arith.addf %40, %41 : vector<2x128xf32>
    %43 = arith.addf %42, %4 : vector<2x128xf32>
    %44 = vector.extract_strided_slice %43 {offsets = [0, 0], sizes = [2, 32], strides = [1, 1]} : vector<2x128xf32> to vector<2x32xf32>
    %45 = arith.negf %44 : vector<2x32xf32>
    %46 = math.exp %45 : vector<2x32xf32>
    %cst_18 = arith.constant 1.000000e+00 : f32
    %47 = vector.broadcast %cst_18 : f32 to vector<2x32xf32>
    %48 = arith.addf %47, %46 : vector<2x32xf32>
    %49 = arith.divf %47, %48 : vector<2x32xf32>
    %50 = vector.extract_strided_slice %43 {offsets = [0, 32], sizes = [2, 32], strides = [1, 1]} : vector<2x128xf32> to vector<2x32xf32>
    %51 = arith.negf %50 : vector<2x32xf32>
    %52 = math.exp %51 : vector<2x32xf32>
    %cst_19 = arith.constant 1.000000e+00 : f32
    %53 = vector.broadcast %cst_19 : f32 to vector<2x32xf32>
    %54 = arith.addf %53, %52 : vector<2x32xf32>
    %55 = arith.divf %53, %54 : vector<2x32xf32>
    %56 = vector.extract_strided_slice %43 {offsets = [0, 64], sizes = [2, 32], strides = [1, 1]} : vector<2x128xf32> to vector<2x32xf32>
    %57 = math.tanh %56 : vector<2x32xf32>
    %58 = vector.extract_strided_slice %43 {offsets = [0, 96], sizes = [2, 32], strides = [1, 1]} : vector<2x128xf32> to vector<2x32xf32>
    %59 = arith.negf %58 : vector<2x32xf32>
    %60 = math.exp %59 : vector<2x32xf32>
    %cst_20 = arith.constant 1.000000e+00 : f32
    %61 = vector.broadcast %cst_20 : f32 to vector<2x32xf32>
    %62 = arith.addf %61, %60 : vector<2x32xf32>
    %63 = arith.divf %61, %62 : vector<2x32xf32>
    %64 = arith.mulf %55, %35 : vector<2x32xf32>
    %65 = arith.mulf %49, %57 : vector<2x32xf32>
    %66 = arith.addf %64, %65 : vector<2x32xf32>
    %67 = math.tanh %66 : vector<2x32xf32>
    %68 = arith.mulf %63, %67 : vector<2x32xf32>
    %c2 = arith.constant 2 : index
    %c0_21 = arith.constant 0 : index
    %c0_22 = arith.constant 0 : index
    %69 = vector.load %arg0[%c2, %c0_21, %c0_22] : memref<8x2x12xf32, #tpu.memory_space<vmem>>, vector<1x2x12xf32>
    %70 = vector.shape_cast %69 : vector<1x2x12xf32> to vector<2x12xf32>
    %cst_23 = arith.constant dense<0.000000e+00> : vector<2x128xf32>
    %71 = tpu.matmul %70, %0, %cst_23 {dimension_numbers = #tpu.dot_dimension_numbers<[1], [0], [0], [1], [0, 0, 1, 1], [], []>} : vector<2x12xf32>, vector<12x128xf32>, vector<2x128xf32> -> vector<2x128xf32>
    %cst_24 = arith.constant dense<0.000000e+00> : vector<2x128xf32>
    %72 = tpu.matmul %68, %1, %cst_24 {dimension_numbers = #tpu.dot_dimension_numbers<[1], [0], [0], [1], [0, 0, 1, 1], [], []>} : vector<2x32xf32>, vector<32x128xf32>, vector<2x128xf32> -> vector<2x128xf32>
    %73 = arith.addf %71, %72 : vector<2x128xf32>
    %74 = arith.addf %73, %4 : vector<2x128xf32>
    %75 = vector.extract_strided_slice %74 {offsets = [0, 0], sizes = [2, 32], strides = [1, 1]} : vector<2x128xf32> to vector<2x32xf32>
    %76 = arith.negf %75 : vector<2x32xf32>
    %77 = math.exp %76 : vector<2x32xf32>
    %cst_25 = arith.constant 1.000000e+00 : f32
    %78 = vector.broadcast %cst_25 : f32 to vector<2x32xf32>
    %79 = arith.addf %78, %77 : vector<2x32xf32>
    %80 = arith.divf %78, %79 : vector<2x32xf32>
    %81 = vector.extract_strided_slice %74 {offsets = [0, 32], sizes = [2, 32], strides = [1, 1]} : vector<2x128xf32> to vector<2x32xf32>
    %82 = arith.negf %81 : vector<2x32xf32>
    %83 = math.exp %82 : vector<2x32xf32>
    %cst_26 = arith.constant 1.000000e+00 : f32
    %84 = vector.broadcast %cst_26 : f32 to vector<2x32xf32>
    %85 = arith.addf %84, %83 : vector<2x32xf32>
    %86 = arith.divf %84, %85 : vector<2x32xf32>
    %87 = vector.extract_strided_slice %74 {offsets = [0, 64], sizes = [2, 32], strides = [1, 1]} : vector<2x128xf32> to vector<2x32xf32>
    %88 = math.tanh %87 : vector<2x32xf32>
    %89 = vector.extract_strided_slice %74 {offsets = [0, 96], sizes = [2, 32], strides = [1, 1]} : vector<2x128xf32> to vector<2x32xf32>
    %90 = arith.negf %89 : vector<2x32xf32>
    %91 = math.exp %90 : vector<2x32xf32>
    %cst_27 = arith.constant 1.000000e+00 : f32
    %92 = vector.broadcast %cst_27 : f32 to vector<2x32xf32>
    %93 = arith.addf %92, %91 : vector<2x32xf32>
    %94 = arith.divf %92, %93 : vector<2x32xf32>
    %95 = arith.mulf %86, %66 : vector<2x32xf32>
    %96 = arith.mulf %80, %88 : vector<2x32xf32>
    %97 = arith.addf %95, %96 : vector<2x32xf32>
    %98 = math.tanh %97 : vector<2x32xf32>
    %99 = arith.mulf %94, %98 : vector<2x32xf32>
    %c3 = arith.constant 3 : index
    %c0_28 = arith.constant 0 : index
    %c0_29 = arith.constant 0 : index
    %100 = vector.load %arg0[%c3, %c0_28, %c0_29] : memref<8x2x12xf32, #tpu.memory_space<vmem>>, vector<1x2x12xf32>
    %101 = vector.shape_cast %100 : vector<1x2x12xf32> to vector<2x12xf32>
    %cst_30 = arith.constant dense<0.000000e+00> : vector<2x128xf32>
    %102 = tpu.matmul %101, %0, %cst_30 {dimension_numbers = #tpu.dot_dimension_numbers<[1], [0], [0], [1], [0, 0, 1, 1], [], []>} : vector<2x12xf32>, vector<12x128xf32>, vector<2x128xf32> -> vector<2x128xf32>
    %cst_31 = arith.constant dense<0.000000e+00> : vector<2x128xf32>
    %103 = tpu.matmul %99, %1, %cst_31 {dimension_numbers = #tpu.dot_dimension_numbers<[1], [0], [0], [1], [0, 0, 1, 1], [], []>} : vector<2x32xf32>, vector<32x128xf32>, vector<2x128xf32> -> vector<2x128xf32>
    %104 = arith.addf %102, %103 : vector<2x128xf32>
    %105 = arith.addf %104, %4 : vector<2x128xf32>
    %106 = vector.extract_strided_slice %105 {offsets = [0, 0], sizes = [2, 32], strides = [1, 1]} : vector<2x128xf32> to vector<2x32xf32>
    %107 = arith.negf %106 : vector<2x32xf32>
    %108 = math.exp %107 : vector<2x32xf32>
    %cst_32 = arith.constant 1.000000e+00 : f32
    %109 = vector.broadcast %cst_32 : f32 to vector<2x32xf32>
    %110 = arith.addf %109, %108 : vector<2x32xf32>
    %111 = arith.divf %109, %110 : vector<2x32xf32>
    %112 = vector.extract_strided_slice %105 {offsets = [0, 32], sizes = [2, 32], strides = [1, 1]} : vector<2x128xf32> to vector<2x32xf32>
    %113 = arith.negf %112 : vector<2x32xf32>
    %114 = math.exp %113 : vector<2x32xf32>
    %cst_33 = arith.constant 1.000000e+00 : f32
    %115 = vector.broadcast %cst_33 : f32 to vector<2x32xf32>
    %116 = arith.addf %115, %114 : vector<2x32xf32>
    %117 = arith.divf %115, %116 : vector<2x32xf32>
    %118 = vector.extract_strided_slice %105 {offsets = [0, 64], sizes = [2, 32], strides = [1, 1]} : vector<2x128xf32> to vector<2x32xf32>
    %119 = math.tanh %118 : vector<2x32xf32>
    %120 = vector.extract_strided_slice %105 {offsets = [0, 96], sizes = [2, 32], strides = [1, 1]} : vector<2x128xf32> to vector<2x32xf32>
    %121 = arith.negf %120 : vector<2x32xf32>
    %122 = math.exp %121 : vector<2x32xf32>
    %cst_34 = arith.constant 1.000000e+00 : f32
    %123 = vector.broadcast %cst_34 : f32 to vector<2x32xf32>
    %124 = arith.addf %123, %122 : vector<2x32xf32>
    %125 = arith.divf %123, %124 : vector<2x32xf32>
    %126 = arith.mulf %117, %97 : vector<2x32xf32>
    %127 = arith.mulf %111, %119 : vector<2x32xf32>
    %128 = arith.addf %126, %127 : vector<2x32xf32>
    %129 = math.tanh %128 : vector<2x32xf32>
    %130 = arith.mulf %125, %129 : vector<2x32xf32>
    %c4 = arith.constant 4 : index
    %c0_35 = arith.constant 0 : index
    %c0_36 = arith.constant 0 : index
    %131 = vector.load %arg0[%c4, %c0_35, %c0_36] : memref<8x2x12xf32, #tpu.memory_space<vmem>>, vector<1x2x12xf32>
    %132 = vector.shape_cast %131 : vector<1x2x12xf32> to vector<2x12xf32>
    %cst_37 = arith.constant dense<0.000000e+00> : vector<2x128xf32>
    %133 = tpu.matmul %132, %0, %cst_37 {dimension_numbers = #tpu.dot_dimension_numbers<[1], [0], [0], [1], [0, 0, 1, 1], [], []>} : vector<2x12xf32>, vector<12x128xf32>, vector<2x128xf32> -> vector<2x128xf32>
    %cst_38 = arith.constant dense<0.000000e+00> : vector<2x128xf32>
    %134 = tpu.matmul %130, %1, %cst_38 {dimension_numbers = #tpu.dot_dimension_numbers<[1], [0], [0], [1], [0, 0, 1, 1], [], []>} : vector<2x32xf32>, vector<32x128xf32>, vector<2x128xf32> -> vector<2x128xf32>
    %135 = arith.addf %133, %134 : vector<2x128xf32>
    %136 = arith.addf %135, %4 : vector<2x128xf32>
    %137 = vector.extract_strided_slice %136 {offsets = [0, 0], sizes = [2, 32], strides = [1, 1]} : vector<2x128xf32> to vector<2x32xf32>
    %138 = arith.negf %137 : vector<2x32xf32>
    %139 = math.exp %138 : vector<2x32xf32>
    %cst_39 = arith.constant 1.000000e+00 : f32
    %140 = vector.broadcast %cst_39 : f32 to vector<2x32xf32>
    %141 = arith.addf %140, %139 : vector<2x32xf32>
    %142 = arith.divf %140, %141 : vector<2x32xf32>
    %143 = vector.extract_strided_slice %136 {offsets = [0, 32], sizes = [2, 32], strides = [1, 1]} : vector<2x128xf32> to vector<2x32xf32>
    %144 = arith.negf %143 : vector<2x32xf32>
    %145 = math.exp %144 : vector<2x32xf32>
    %cst_40 = arith.constant 1.000000e+00 : f32
    %146 = vector.broadcast %cst_40 : f32 to vector<2x32xf32>
    %147 = arith.addf %146, %145 : vector<2x32xf32>
    %148 = arith.divf %146, %147 : vector<2x32xf32>
    %149 = vector.extract_strided_slice %136 {offsets = [0, 64], sizes = [2, 32], strides = [1, 1]} : vector<2x128xf32> to vector<2x32xf32>
    %150 = math.tanh %149 : vector<2x32xf32>
    %151 = vector.extract_strided_slice %136 {offsets = [0, 96], sizes = [2, 32], strides = [1, 1]} : vector<2x128xf32> to vector<2x32xf32>
    %152 = arith.negf %151 : vector<2x32xf32>
    %153 = math.exp %152 : vector<2x32xf32>
    %cst_41 = arith.constant 1.000000e+00 : f32
    %154 = vector.broadcast %cst_41 : f32 to vector<2x32xf32>
    %155 = arith.addf %154, %153 : vector<2x32xf32>
    %156 = arith.divf %154, %155 : vector<2x32xf32>
    %157 = arith.mulf %148, %128 : vector<2x32xf32>
    %158 = arith.mulf %142, %150 : vector<2x32xf32>
    %159 = arith.addf %157, %158 : vector<2x32xf32>
    %160 = math.tanh %159 : vector<2x32xf32>
    %161 = arith.mulf %156, %160 : vector<2x32xf32>
    %c5 = arith.constant 5 : index
    %c0_42 = arith.constant 0 : index
    %c0_43 = arith.constant 0 : index
    %162 = vector.load %arg0[%c5, %c0_42, %c0_43] : memref<8x2x12xf32, #tpu.memory_space<vmem>>, vector<1x2x12xf32>
    %163 = vector.shape_cast %162 : vector<1x2x12xf32> to vector<2x12xf32>
    %cst_44 = arith.constant dense<0.000000e+00> : vector<2x128xf32>
    %164 = tpu.matmul %163, %0, %cst_44 {dimension_numbers = #tpu.dot_dimension_numbers<[1], [0], [0], [1], [0, 0, 1, 1], [], []>} : vector<2x12xf32>, vector<12x128xf32>, vector<2x128xf32> -> vector<2x128xf32>
    %cst_45 = arith.constant dense<0.000000e+00> : vector<2x128xf32>
    %165 = tpu.matmul %161, %1, %cst_45 {dimension_numbers = #tpu.dot_dimension_numbers<[1], [0], [0], [1], [0, 0, 1, 1], [], []>} : vector<2x32xf32>, vector<32x128xf32>, vector<2x128xf32> -> vector<2x128xf32>
    %166 = arith.addf %164, %165 : vector<2x128xf32>
    %167 = arith.addf %166, %4 : vector<2x128xf32>
    %168 = vector.extract_strided_slice %167 {offsets = [0, 0], sizes = [2, 32], strides = [1, 1]} : vector<2x128xf32> to vector<2x32xf32>
    %169 = arith.negf %168 : vector<2x32xf32>
    %170 = math.exp %169 : vector<2x32xf32>
    %cst_46 = arith.constant 1.000000e+00 : f32
    %171 = vector.broadcast %cst_46 : f32 to vector<2x32xf32>
    %172 = arith.addf %171, %170 : vector<2x32xf32>
    %173 = arith.divf %171, %172 : vector<2x32xf32>
    %174 = vector.extract_strided_slice %167 {offsets = [0, 32], sizes = [2, 32], strides = [1, 1]} : vector<2x128xf32> to vector<2x32xf32>
    %175 = arith.negf %174 : vector<2x32xf32>
    %176 = math.exp %175 : vector<2x32xf32>
    %cst_47 = arith.constant 1.000000e+00 : f32
    %177 = vector.broadcast %cst_47 : f32 to vector<2x32xf32>
    %178 = arith.addf %177, %176 : vector<2x32xf32>
    %179 = arith.divf %177, %178 : vector<2x32xf32>
    %180 = vector.extract_strided_slice %167 {offsets = [0, 64], sizes = [2, 32], strides = [1, 1]} : vector<2x128xf32> to vector<2x32xf32>
    %181 = math.tanh %180 : vector<2x32xf32>
    %182 = vector.extract_strided_slice %167 {offsets = [0, 96], sizes = [2, 32], strides = [1, 1]} : vector<2x128xf32> to vector<2x32xf32>
    %183 = arith.negf %182 : vector<2x32xf32>
    %184 = math.exp %183 : vector<2x32xf32>
    %cst_48 = arith.constant 1.000000e+00 : f32
    %185 = vector.broadcast %cst_48 : f32 to vector<2x32xf32>
    %186 = arith.addf %185, %184 : vector<2x32xf32>
    %187 = arith.divf %185, %186 : vector<2x32xf32>
    %188 = arith.mulf %179, %159 : vector<2x32xf32>
    %189 = arith.mulf %173, %181 : vector<2x32xf32>
    %190 = arith.addf %188, %189 : vector<2x32xf32>
    %191 = math.tanh %190 : vector<2x32xf32>
    %192 = arith.mulf %187, %191 : vector<2x32xf32>
    %c6 = arith.constant 6 : index
    %c0_49 = arith.constant 0 : index
    %c0_50 = arith.constant 0 : index
    %193 = vector.load %arg0[%c6, %c0_49, %c0_50] : memref<8x2x12xf32, #tpu.memory_space<vmem>>, vector<1x2x12xf32>
    %194 = vector.shape_cast %193 : vector<1x2x12xf32> to vector<2x12xf32>
    %cst_51 = arith.constant dense<0.000000e+00> : vector<2x128xf32>
    %195 = tpu.matmul %194, %0, %cst_51 {dimension_numbers = #tpu.dot_dimension_numbers<[1], [0], [0], [1], [0, 0, 1, 1], [], []>} : vector<2x12xf32>, vector<12x128xf32>, vector<2x128xf32> -> vector<2x128xf32>
    %cst_52 = arith.constant dense<0.000000e+00> : vector<2x128xf32>
    %196 = tpu.matmul %192, %1, %cst_52 {dimension_numbers = #tpu.dot_dimension_numbers<[1], [0], [0], [1], [0, 0, 1, 1], [], []>} : vector<2x32xf32>, vector<32x128xf32>, vector<2x128xf32> -> vector<2x128xf32>
    %197 = arith.addf %195, %196 : vector<2x128xf32>
    %198 = arith.addf %197, %4 : vector<2x128xf32>
    %199 = vector.extract_strided_slice %198 {offsets = [0, 0], sizes = [2, 32], strides = [1, 1]} : vector<2x128xf32> to vector<2x32xf32>
    %200 = arith.negf %199 : vector<2x32xf32>
    %201 = math.exp %200 : vector<2x32xf32>
    %cst_53 = arith.constant 1.000000e+00 : f32
    %202 = vector.broadcast %cst_53 : f32 to vector<2x32xf32>
    %203 = arith.addf %202, %201 : vector<2x32xf32>
    %204 = arith.divf %202, %203 : vector<2x32xf32>
    %205 = vector.extract_strided_slice %198 {offsets = [0, 32], sizes = [2, 32], strides = [1, 1]} : vector<2x128xf32> to vector<2x32xf32>
    %206 = arith.negf %205 : vector<2x32xf32>
    %207 = math.exp %206 : vector<2x32xf32>
    %cst_54 = arith.constant 1.000000e+00 : f32
    %208 = vector.broadcast %cst_54 : f32 to vector<2x32xf32>
    %209 = arith.addf %208, %207 : vector<2x32xf32>
    %210 = arith.divf %208, %209 : vector<2x32xf32>
    %211 = vector.extract_strided_slice %198 {offsets = [0, 64], sizes = [2, 32], strides = [1, 1]} : vector<2x128xf32> to vector<2x32xf32>
    %212 = math.tanh %211 : vector<2x32xf32>
    %213 = vector.extract_strided_slice %198 {offsets = [0, 96], sizes = [2, 32], strides = [1, 1]} : vector<2x128xf32> to vector<2x32xf32>
    %214 = arith.negf %213 : vector<2x32xf32>
    %215 = math.exp %214 : vector<2x32xf32>
    %cst_55 = arith.constant 1.000000e+00 : f32
    %216 = vector.broadcast %cst_55 : f32 to vector<2x32xf32>
    %217 = arith.addf %216, %215 : vector<2x32xf32>
    %218 = arith.divf %216, %217 : vector<2x32xf32>
    %219 = arith.mulf %210, %190 : vector<2x32xf32>
    %220 = arith.mulf %204, %212 : vector<2x32xf32>
    %221 = arith.addf %219, %220 : vector<2x32xf32>
    %222 = math.tanh %221 : vector<2x32xf32>
    %223 = arith.mulf %218, %222 : vector<2x32xf32>
    %c7 = arith.constant 7 : index
    %c0_56 = arith.constant 0 : index
    %c0_57 = arith.constant 0 : index
    %224 = vector.load %arg0[%c7, %c0_56, %c0_57] : memref<8x2x12xf32, #tpu.memory_space<vmem>>, vector<1x2x12xf32>
    %225 = vector.shape_cast %224 : vector<1x2x12xf32> to vector<2x12xf32>
    %cst_58 = arith.constant dense<0.000000e+00> : vector<2x128xf32>
    %226 = tpu.matmul %225, %0, %cst_58 {dimension_numbers = #tpu.dot_dimension_numbers<[1], [0], [0], [1], [0, 0, 1, 1], [], []>} : vector<2x12xf32>, vector<12x128xf32>, vector<2x128xf32> -> vector<2x128xf32>
    %cst_59 = arith.constant dense<0.000000e+00> : vector<2x128xf32>
    %227 = tpu.matmul %223, %1, %cst_59 {dimension_numbers = #tpu.dot_dimension_numbers<[1], [0], [0], [1], [0, 0, 1, 1], [], []>} : vector<2x32xf32>, vector<32x128xf32>, vector<2x128xf32> -> vector<2x128xf32>
    %228 = arith.addf %226, %227 : vector<2x128xf32>
    %229 = arith.addf %228, %4 : vector<2x128xf32>
    %230 = vector.extract_strided_slice %229 {offsets = [0, 0], sizes = [2, 32], strides = [1, 1]} : vector<2x128xf32> to vector<2x32xf32>
    %231 = arith.negf %230 : vector<2x32xf32>
    %232 = math.exp %231 : vector<2x32xf32>
    %cst_60 = arith.constant 1.000000e+00 : f32
    %233 = vector.broadcast %cst_60 : f32 to vector<2x32xf32>
    %234 = arith.addf %233, %232 : vector<2x32xf32>
    %235 = arith.divf %233, %234 : vector<2x32xf32>
    %236 = vector.extract_strided_slice %229 {offsets = [0, 32], sizes = [2, 32], strides = [1, 1]} : vector<2x128xf32> to vector<2x32xf32>
    %237 = arith.negf %236 : vector<2x32xf32>
    %238 = math.exp %237 : vector<2x32xf32>
    %cst_61 = arith.constant 1.000000e+00 : f32
    %239 = vector.broadcast %cst_61 : f32 to vector<2x32xf32>
    %240 = arith.addf %239, %238 : vector<2x32xf32>
    %241 = arith.divf %239, %240 : vector<2x32xf32>
    %242 = vector.extract_strided_slice %229 {offsets = [0, 64], sizes = [2, 32], strides = [1, 1]} : vector<2x128xf32> to vector<2x32xf32>
    %243 = math.tanh %242 : vector<2x32xf32>
    %244 = vector.extract_strided_slice %229 {offsets = [0, 96], sizes = [2, 32], strides = [1, 1]} : vector<2x128xf32> to vector<2x32xf32>
    %245 = arith.negf %244 : vector<2x32xf32>
    %246 = math.exp %245 : vector<2x32xf32>
    %cst_62 = arith.constant 1.000000e+00 : f32
    %247 = vector.broadcast %cst_62 : f32 to vector<2x32xf32>
    %248 = arith.addf %247, %246 : vector<2x32xf32>
    %249 = arith.divf %247, %248 : vector<2x32xf32>
    %250 = arith.mulf %241, %221 : vector<2x32xf32>
    %251 = arith.mulf %235, %243 : vector<2x32xf32>
    %252 = arith.addf %250, %251 : vector<2x32xf32>
    %253 = math.tanh %252 : vector<2x32xf32>
    %254 = arith.mulf %249, %253 : vector<2x32xf32>
    %c0_63 = arith.constant 0 : index
    %c0_64 = arith.constant 0 : index
    %255 = vector.load %arg4[%c0_63, %c0_64] : memref<32x128xf32, #tpu.memory_space<vmem>>, vector<32x128xf32>
    %c0_65 = arith.constant 0 : index
    %c0_66 = arith.constant 0 : index
    %256 = vector.load %arg5[%c0_65, %c0_66] : memref<32x128xf32, #tpu.memory_space<vmem>>, vector<32x128xf32>
    %c0_67 = arith.constant 0 : index
    %c0_68 = arith.constant 0 : index
    %257 = vector.load %arg6[%c0_67, %c0_68] : memref<1x128xf32, #tpu.memory_space<vmem>>, vector<1x128xf32>
    %258 = vector.shape_cast %257 : vector<1x128xf32> to vector<1x128xf32>
    %259 = vector.broadcast %258 : vector<1x128xf32> to vector<2x128xf32>
    %cst_69 = arith.constant 0.000000e+00 : f32
    %260 = vector.broadcast %cst_69 : f32 to vector<2x32xf32>
    %cst_70 = arith.constant 0.000000e+00 : f32
    %261 = vector.broadcast %cst_70 : f32 to vector<2x32xf32>
    %cst_71 = arith.constant dense<0.000000e+00> : vector<2x128xf32>
    %262 = tpu.matmul %37, %255, %cst_71 {dimension_numbers = #tpu.dot_dimension_numbers<[1], [0], [0], [1], [0, 0, 1, 1], [], []>} : vector<2x32xf32>, vector<32x128xf32>, vector<2x128xf32> -> vector<2x128xf32>
    %cst_72 = arith.constant dense<0.000000e+00> : vector<2x128xf32>
    %263 = tpu.matmul %260, %256, %cst_72 {dimension_numbers = #tpu.dot_dimension_numbers<[1], [0], [0], [1], [0, 0, 1, 1], [], []>} : vector<2x32xf32>, vector<32x128xf32>, vector<2x128xf32> -> vector<2x128xf32>
    %264 = arith.addf %262, %263 : vector<2x128xf32>
    %265 = arith.addf %264, %259 : vector<2x128xf32>
    %266 = vector.extract_strided_slice %265 {offsets = [0, 0], sizes = [2, 32], strides = [1, 1]} : vector<2x128xf32> to vector<2x32xf32>
    %267 = arith.negf %266 : vector<2x32xf32>
    %268 = math.exp %267 : vector<2x32xf32>
    %cst_73 = arith.constant 1.000000e+00 : f32
    %269 = vector.broadcast %cst_73 : f32 to vector<2x32xf32>
    %270 = arith.addf %269, %268 : vector<2x32xf32>
    %271 = arith.divf %269, %270 : vector<2x32xf32>
    %272 = vector.extract_strided_slice %265 {offsets = [0, 32], sizes = [2, 32], strides = [1, 1]} : vector<2x128xf32> to vector<2x32xf32>
    %273 = arith.negf %272 : vector<2x32xf32>
    %274 = math.exp %273 : vector<2x32xf32>
    %cst_74 = arith.constant 1.000000e+00 : f32
    %275 = vector.broadcast %cst_74 : f32 to vector<2x32xf32>
    %276 = arith.addf %275, %274 : vector<2x32xf32>
    %277 = arith.divf %275, %276 : vector<2x32xf32>
    %278 = vector.extract_strided_slice %265 {offsets = [0, 64], sizes = [2, 32], strides = [1, 1]} : vector<2x128xf32> to vector<2x32xf32>
    %279 = math.tanh %278 : vector<2x32xf32>
    %280 = vector.extract_strided_slice %265 {offsets = [0, 96], sizes = [2, 32], strides = [1, 1]} : vector<2x128xf32> to vector<2x32xf32>
    %281 = arith.negf %280 : vector<2x32xf32>
    %282 = math.exp %281 : vector<2x32xf32>
    %cst_75 = arith.constant 1.000000e+00 : f32
    %283 = vector.broadcast %cst_75 : f32 to vector<2x32xf32>
    %284 = arith.addf %283, %282 : vector<2x32xf32>
    %285 = arith.divf %283, %284 : vector<2x32xf32>
    %286 = arith.mulf %277, %261 : vector<2x32xf32>
    %287 = arith.mulf %271, %279 : vector<2x32xf32>
    %288 = arith.addf %286, %287 : vector<2x32xf32>
    %289 = math.tanh %288 : vector<2x32xf32>
    %290 = arith.mulf %285, %289 : vector<2x32xf32>
    %cst_76 = arith.constant dense<0.000000e+00> : vector<2x128xf32>
    %291 = tpu.matmul %68, %255, %cst_76 {dimension_numbers = #tpu.dot_dimension_numbers<[1], [0], [0], [1], [0, 0, 1, 1], [], []>} : vector<2x32xf32>, vector<32x128xf32>, vector<2x128xf32> -> vector<2x128xf32>
    %cst_77 = arith.constant dense<0.000000e+00> : vector<2x128xf32>
    %292 = tpu.matmul %290, %256, %cst_77 {dimension_numbers = #tpu.dot_dimension_numbers<[1], [0], [0], [1], [0, 0, 1, 1], [], []>} : vector<2x32xf32>, vector<32x128xf32>, vector<2x128xf32> -> vector<2x128xf32>
    %293 = arith.addf %291, %292 : vector<2x128xf32>
    %294 = arith.addf %293, %259 : vector<2x128xf32>
    %295 = vector.extract_strided_slice %294 {offsets = [0, 0], sizes = [2, 32], strides = [1, 1]} : vector<2x128xf32> to vector<2x32xf32>
    %296 = arith.negf %295 : vector<2x32xf32>
    %297 = math.exp %296 : vector<2x32xf32>
    %cst_78 = arith.constant 1.000000e+00 : f32
    %298 = vector.broadcast %cst_78 : f32 to vector<2x32xf32>
    %299 = arith.addf %298, %297 : vector<2x32xf32>
    %300 = arith.divf %298, %299 : vector<2x32xf32>
    %301 = vector.extract_strided_slice %294 {offsets = [0, 32], sizes = [2, 32], strides = [1, 1]} : vector<2x128xf32> to vector<2x32xf32>
    %302 = arith.negf %301 : vector<2x32xf32>
    %303 = math.exp %302 : vector<2x32xf32>
    %cst_79 = arith.constant 1.000000e+00 : f32
    %304 = vector.broadcast %cst_79 : f32 to vector<2x32xf32>
    %305 = arith.addf %304, %303 : vector<2x32xf32>
    %306 = arith.divf %304, %305 : vector<2x32xf32>
    %307 = vector.extract_strided_slice %294 {offsets = [0, 64], sizes = [2, 32], strides = [1, 1]} : vector<2x128xf32> to vector<2x32xf32>
    %308 = math.tanh %307 : vector<2x32xf32>
    %309 = vector.extract_strided_slice %294 {offsets = [0, 96], sizes = [2, 32], strides = [1, 1]} : vector<2x128xf32> to vector<2x32xf32>
    %310 = arith.negf %309 : vector<2x32xf32>
    %311 = math.exp %310 : vector<2x32xf32>
    %cst_80 = arith.constant 1.000000e+00 : f32
    %312 = vector.broadcast %cst_80 : f32 to vector<2x32xf32>
    %313 = arith.addf %312, %311 : vector<2x32xf32>
    %314 = arith.divf %312, %313 : vector<2x32xf32>
    %315 = arith.mulf %306, %288 : vector<2x32xf32>
    %316 = arith.mulf %300, %308 : vector<2x32xf32>
    %317 = arith.addf %315, %316 : vector<2x32xf32>
    %318 = math.tanh %317 : vector<2x32xf32>
    %319 = arith.mulf %314, %318 : vector<2x32xf32>
    %cst_81 = arith.constant dense<0.000000e+00> : vector<2x128xf32>
    %320 = tpu.matmul %99, %255, %cst_81 {dimension_numbers = #tpu.dot_dimension_numbers<[1], [0], [0], [1], [0, 0, 1, 1], [], []>} : vector<2x32xf32>, vector<32x128xf32>, vector<2x128xf32> -> vector<2x128xf32>
    %cst_82 = arith.constant dense<0.000000e+00> : vector<2x128xf32>
    %321 = tpu.matmul %319, %256, %cst_82 {dimension_numbers = #tpu.dot_dimension_numbers<[1], [0], [0], [1], [0, 0, 1, 1], [], []>} : vector<2x32xf32>, vector<32x128xf32>, vector<2x128xf32> -> vector<2x128xf32>
    %322 = arith.addf %320, %321 : vector<2x128xf32>
    %323 = arith.addf %322, %259 : vector<2x128xf32>
    %324 = vector.extract_strided_slice %323 {offsets = [0, 0], sizes = [2, 32], strides = [1, 1]} : vector<2x128xf32> to vector<2x32xf32>
    %325 = arith.negf %324 : vector<2x32xf32>
    %326 = math.exp %325 : vector<2x32xf32>
    %cst_83 = arith.constant 1.000000e+00 : f32
    %327 = vector.broadcast %cst_83 : f32 to vector<2x32xf32>
    %328 = arith.addf %327, %326 : vector<2x32xf32>
    %329 = arith.divf %327, %328 : vector<2x32xf32>
    %330 = vector.extract_strided_slice %323 {offsets = [0, 32], sizes = [2, 32], strides = [1, 1]} : vector<2x128xf32> to vector<2x32xf32>
    %331 = arith.negf %330 : vector<2x32xf32>
    %332 = math.exp %331 : vector<2x32xf32>
    %cst_84 = arith.constant 1.000000e+00 : f32
    %333 = vector.broadcast %cst_84 : f32 to vector<2x32xf32>
    %334 = arith.addf %333, %332 : vector<2x32xf32>
    %335 = arith.divf %333, %334 : vector<2x32xf32>
    %336 = vector.extract_strided_slice %323 {offsets = [0, 64], sizes = [2, 32], strides = [1, 1]} : vector<2x128xf32> to vector<2x32xf32>
    %337 = math.tanh %336 : vector<2x32xf32>
    %338 = vector.extract_strided_slice %323 {offsets = [0, 96], sizes = [2, 32], strides = [1, 1]} : vector<2x128xf32> to vector<2x32xf32>
    %339 = arith.negf %338 : vector<2x32xf32>
    %340 = math.exp %339 : vector<2x32xf32>
    %cst_85 = arith.constant 1.000000e+00 : f32
    %341 = vector.broadcast %cst_85 : f32 to vector<2x32xf32>
    %342 = arith.addf %341, %340 : vector<2x32xf32>
    %343 = arith.divf %341, %342 : vector<2x32xf32>
    %344 = arith.mulf %335, %317 : vector<2x32xf32>
    %345 = arith.mulf %329, %337 : vector<2x32xf32>
    %346 = arith.addf %344, %345 : vector<2x32xf32>
    %347 = math.tanh %346 : vector<2x32xf32>
    %348 = arith.mulf %343, %347 : vector<2x32xf32>
    %cst_86 = arith.constant dense<0.000000e+00> : vector<2x128xf32>
    %349 = tpu.matmul %130, %255, %cst_86 {dimension_numbers = #tpu.dot_dimension_numbers<[1], [0], [0], [1], [0, 0, 1, 1], [], []>} : vector<2x32xf32>, vector<32x128xf32>, vector<2x128xf32> -> vector<2x128xf32>
    %cst_87 = arith.constant dense<0.000000e+00> : vector<2x128xf32>
    %350 = tpu.matmul %348, %256, %cst_87 {dimension_numbers = #tpu.dot_dimension_numbers<[1], [0], [0], [1], [0, 0, 1, 1], [], []>} : vector<2x32xf32>, vector<32x128xf32>, vector<2x128xf32> -> vector<2x128xf32>
    %351 = arith.addf %349, %350 : vector<2x128xf32>
    %352 = arith.addf %351, %259 : vector<2x128xf32>
    %353 = vector.extract_strided_slice %352 {offsets = [0, 0], sizes = [2, 32], strides = [1, 1]} : vector<2x128xf32> to vector<2x32xf32>
    %354 = arith.negf %353 : vector<2x32xf32>
    %355 = math.exp %354 : vector<2x32xf32>
    %cst_88 = arith.constant 1.000000e+00 : f32
    %356 = vector.broadcast %cst_88 : f32 to vector<2x32xf32>
    %357 = arith.addf %356, %355 : vector<2x32xf32>
    %358 = arith.divf %356, %357 : vector<2x32xf32>
    %359 = vector.extract_strided_slice %352 {offsets = [0, 32], sizes = [2, 32], strides = [1, 1]} : vector<2x128xf32> to vector<2x32xf32>
    %360 = arith.negf %359 : vector<2x32xf32>
    %361 = math.exp %360 : vector<2x32xf32>
    %cst_89 = arith.constant 1.000000e+00 : f32
    %362 = vector.broadcast %cst_89 : f32 to vector<2x32xf32>
    %363 = arith.addf %362, %361 : vector<2x32xf32>
    %364 = arith.divf %362, %363 : vector<2x32xf32>
    %365 = vector.extract_strided_slice %352 {offsets = [0, 64], sizes = [2, 32], strides = [1, 1]} : vector<2x128xf32> to vector<2x32xf32>
    %366 = math.tanh %365 : vector<2x32xf32>
    %367 = vector.extract_strided_slice %352 {offsets = [0, 96], sizes = [2, 32], strides = [1, 1]} : vector<2x128xf32> to vector<2x32xf32>
    %368 = arith.negf %367 : vector<2x32xf32>
    %369 = math.exp %368 : vector<2x32xf32>
    %cst_90 = arith.constant 1.000000e+00 : f32
    %370 = vector.broadcast %cst_90 : f32 to vector<2x32xf32>
    %371 = arith.addf %370, %369 : vector<2x32xf32>
    %372 = arith.divf %370, %371 : vector<2x32xf32>
    %373 = arith.mulf %364, %346 : vector<2x32xf32>
    %374 = arith.mulf %358, %366 : vector<2x32xf32>
    %375 = arith.addf %373, %374 : vector<2x32xf32>
    %376 = math.tanh %375 : vector<2x32xf32>
    %377 = arith.mulf %372, %376 : vector<2x32xf32>
    %cst_91 = arith.constant dense<0.000000e+00> : vector<2x128xf32>
    %378 = tpu.matmul %161, %255, %cst_91 {dimension_numbers = #tpu.dot_dimension_numbers<[1], [0], [0], [1], [0, 0, 1, 1], [], []>} : vector<2x32xf32>, vector<32x128xf32>, vector<2x128xf32> -> vector<2x128xf32>
    %cst_92 = arith.constant dense<0.000000e+00> : vector<2x128xf32>
    %379 = tpu.matmul %377, %256, %cst_92 {dimension_numbers = #tpu.dot_dimension_numbers<[1], [0], [0], [1], [0, 0, 1, 1], [], []>} : vector<2x32xf32>, vector<32x128xf32>, vector<2x128xf32> -> vector<2x128xf32>
    %380 = arith.addf %378, %379 : vector<2x128xf32>
    %381 = arith.addf %380, %259 : vector<2x128xf32>
    %382 = vector.extract_strided_slice %381 {offsets = [0, 0], sizes = [2, 32], strides = [1, 1]} : vector<2x128xf32> to vector<2x32xf32>
    %383 = arith.negf %382 : vector<2x32xf32>
    %384 = math.exp %383 : vector<2x32xf32>
    %cst_93 = arith.constant 1.000000e+00 : f32
    %385 = vector.broadcast %cst_93 : f32 to vector<2x32xf32>
    %386 = arith.addf %385, %384 : vector<2x32xf32>
    %387 = arith.divf %385, %386 : vector<2x32xf32>
    %388 = vector.extract_strided_slice %381 {offsets = [0, 32], sizes = [2, 32], strides = [1, 1]} : vector<2x128xf32> to vector<2x32xf32>
    %389 = arith.negf %388 : vector<2x32xf32>
    %390 = math.exp %389 : vector<2x32xf32>
    %cst_94 = arith.constant 1.000000e+00 : f32
    %391 = vector.broadcast %cst_94 : f32 to vector<2x32xf32>
    %392 = arith.addf %391, %390 : vector<2x32xf32>
    %393 = arith.divf %391, %392 : vector<2x32xf32>
    %394 = vector.extract_strided_slice %381 {offsets = [0, 64], sizes = [2, 32], strides = [1, 1]} : vector<2x128xf32> to vector<2x32xf32>
    %395 = math.tanh %394 : vector<2x32xf32>
    %396 = vector.extract_strided_slice %381 {offsets = [0, 96], sizes = [2, 32], strides = [1, 1]} : vector<2x128xf32> to vector<2x32xf32>
    %397 = arith.negf %396 : vector<2x32xf32>
    %398 = math.exp %397 : vector<2x32xf32>
    %cst_95 = arith.constant 1.000000e+00 : f32
    %399 = vector.broadcast %cst_95 : f32 to vector<2x32xf32>
    %400 = arith.addf %399, %398 : vector<2x32xf32>
    %401 = arith.divf %399, %400 : vector<2x32xf32>
    %402 = arith.mulf %393, %375 : vector<2x32xf32>
    %403 = arith.mulf %387, %395 : vector<2x32xf32>
    %404 = arith.addf %402, %403 : vector<2x32xf32>
    %405 = math.tanh %404 : vector<2x32xf32>
    %406 = arith.mulf %401, %405 : vector<2x32xf32>
    %cst_96 = arith.constant dense<0.000000e+00> : vector<2x128xf32>
    %407 = tpu.matmul %192, %255, %cst_96 {dimension_numbers = #tpu.dot_dimension_numbers<[1], [0], [0], [1], [0, 0, 1, 1], [], []>} : vector<2x32xf32>, vector<32x128xf32>, vector<2x128xf32> -> vector<2x128xf32>
    %cst_97 = arith.constant dense<0.000000e+00> : vector<2x128xf32>
    %408 = tpu.matmul %406, %256, %cst_97 {dimension_numbers = #tpu.dot_dimension_numbers<[1], [0], [0], [1], [0, 0, 1, 1], [], []>} : vector<2x32xf32>, vector<32x128xf32>, vector<2x128xf32> -> vector<2x128xf32>
    %409 = arith.addf %407, %408 : vector<2x128xf32>
    %410 = arith.addf %409, %259 : vector<2x128xf32>
    %411 = vector.extract_strided_slice %410 {offsets = [0, 0], sizes = [2, 32], strides = [1, 1]} : vector<2x128xf32> to vector<2x32xf32>
    %412 = arith.negf %411 : vector<2x32xf32>
    %413 = math.exp %412 : vector<2x32xf32>
    %cst_98 = arith.constant 1.000000e+00 : f32
    %414 = vector.broadcast %cst_98 : f32 to vector<2x32xf32>
    %415 = arith.addf %414, %413 : vector<2x32xf32>
    %416 = arith.divf %414, %415 : vector<2x32xf32>
    %417 = vector.extract_strided_slice %410 {offsets = [0, 32], sizes = [2, 32], strides = [1, 1]} : vector<2x128xf32> to vector<2x32xf32>
    %418 = arith.negf %417 : vector<2x32xf32>
    %419 = math.exp %418 : vector<2x32xf32>
    %cst_99 = arith.constant 1.000000e+00 : f32
    %420 = vector.broadcast %cst_99 : f32 to vector<2x32xf32>
    %421 = arith.addf %420, %419 : vector<2x32xf32>
    %422 = arith.divf %420, %421 : vector<2x32xf32>
    %423 = vector.extract_strided_slice %410 {offsets = [0, 64], sizes = [2, 32], strides = [1, 1]} : vector<2x128xf32> to vector<2x32xf32>
    %424 = math.tanh %423 : vector<2x32xf32>
    %425 = vector.extract_strided_slice %410 {offsets = [0, 96], sizes = [2, 32], strides = [1, 1]} : vector<2x128xf32> to vector<2x32xf32>
    %426 = arith.negf %425 : vector<2x32xf32>
    %427 = math.exp %426 : vector<2x32xf32>
    %cst_100 = arith.constant 1.000000e+00 : f32
    %428 = vector.broadcast %cst_100 : f32 to vector<2x32xf32>
    %429 = arith.addf %428, %427 : vector<2x32xf32>
    %430 = arith.divf %428, %429 : vector<2x32xf32>
    %431 = arith.mulf %422, %404 : vector<2x32xf32>
    %432 = arith.mulf %416, %424 : vector<2x32xf32>
    %433 = arith.addf %431, %432 : vector<2x32xf32>
    %434 = math.tanh %433 : vector<2x32xf32>
    %435 = arith.mulf %430, %434 : vector<2x32xf32>
    %cst_101 = arith.constant dense<0.000000e+00> : vector<2x128xf32>
    %436 = tpu.matmul %223, %255, %cst_101 {dimension_numbers = #tpu.dot_dimension_numbers<[1], [0], [0], [1], [0, 0, 1, 1], [], []>} : vector<2x32xf32>, vector<32x128xf32>, vector<2x128xf32> -> vector<2x128xf32>
    %cst_102 = arith.constant dense<0.000000e+00> : vector<2x128xf32>
    %437 = tpu.matmul %435, %256, %cst_102 {dimension_numbers = #tpu.dot_dimension_numbers<[1], [0], [0], [1], [0, 0, 1, 1], [], []>} : vector<2x32xf32>, vector<32x128xf32>, vector<2x128xf32> -> vector<2x128xf32>
    %438 = arith.addf %436, %437 : vector<2x128xf32>
    %439 = arith.addf %438, %259 : vector<2x128xf32>
    %440 = vector.extract_strided_slice %439 {offsets = [0, 0], sizes = [2, 32], strides = [1, 1]} : vector<2x128xf32> to vector<2x32xf32>
    %441 = arith.negf %440 : vector<2x32xf32>
    %442 = math.exp %441 : vector<2x32xf32>
    %cst_103 = arith.constant 1.000000e+00 : f32
    %443 = vector.broadcast %cst_103 : f32 to vector<2x32xf32>
    %444 = arith.addf %443, %442 : vector<2x32xf32>
    %445 = arith.divf %443, %444 : vector<2x32xf32>
    %446 = vector.extract_strided_slice %439 {offsets = [0, 32], sizes = [2, 32], strides = [1, 1]} : vector<2x128xf32> to vector<2x32xf32>
    %447 = arith.negf %446 : vector<2x32xf32>
    %448 = math.exp %447 : vector<2x32xf32>
    %cst_104 = arith.constant 1.000000e+00 : f32
    %449 = vector.broadcast %cst_104 : f32 to vector<2x32xf32>
    %450 = arith.addf %449, %448 : vector<2x32xf32>
    %451 = arith.divf %449, %450 : vector<2x32xf32>
    %452 = vector.extract_strided_slice %439 {offsets = [0, 64], sizes = [2, 32], strides = [1, 1]} : vector<2x128xf32> to vector<2x32xf32>
    %453 = math.tanh %452 : vector<2x32xf32>
    %454 = vector.extract_strided_slice %439 {offsets = [0, 96], sizes = [2, 32], strides = [1, 1]} : vector<2x128xf32> to vector<2x32xf32>
    %455 = arith.negf %454 : vector<2x32xf32>
    %456 = math.exp %455 : vector<2x32xf32>
    %cst_105 = arith.constant 1.000000e+00 : f32
    %457 = vector.broadcast %cst_105 : f32 to vector<2x32xf32>
    %458 = arith.addf %457, %456 : vector<2x32xf32>
    %459 = arith.divf %457, %458 : vector<2x32xf32>
    %460 = arith.mulf %451, %433 : vector<2x32xf32>
    %461 = arith.mulf %445, %453 : vector<2x32xf32>
    %462 = arith.addf %460, %461 : vector<2x32xf32>
    %463 = math.tanh %462 : vector<2x32xf32>
    %464 = arith.mulf %459, %463 : vector<2x32xf32>
    %cst_106 = arith.constant dense<0.000000e+00> : vector<2x128xf32>
    %465 = tpu.matmul %254, %255, %cst_106 {dimension_numbers = #tpu.dot_dimension_numbers<[1], [0], [0], [1], [0, 0, 1, 1], [], []>} : vector<2x32xf32>, vector<32x128xf32>, vector<2x128xf32> -> vector<2x128xf32>
    %cst_107 = arith.constant dense<0.000000e+00> : vector<2x128xf32>
    %466 = tpu.matmul %464, %256, %cst_107 {dimension_numbers = #tpu.dot_dimension_numbers<[1], [0], [0], [1], [0, 0, 1, 1], [], []>} : vector<2x32xf32>, vector<32x128xf32>, vector<2x128xf32> -> vector<2x128xf32>
    %467 = arith.addf %465, %466 : vector<2x128xf32>
    %468 = arith.addf %467, %259 : vector<2x128xf32>
    %469 = vector.extract_strided_slice %468 {offsets = [0, 0], sizes = [2, 32], strides = [1, 1]} : vector<2x128xf32> to vector<2x32xf32>
    %470 = arith.negf %469 : vector<2x32xf32>
    %471 = math.exp %470 : vector<2x32xf32>
    %cst_108 = arith.constant 1.000000e+00 : f32
    %472 = vector.broadcast %cst_108 : f32 to vector<2x32xf32>
    %473 = arith.addf %472, %471 : vector<2x32xf32>
    %474 = arith.divf %472, %473 : vector<2x32xf32>
    %475 = vector.extract_strided_slice %468 {offsets = [0, 32], sizes = [2, 32], strides = [1, 1]} : vector<2x128xf32> to vector<2x32xf32>
    %476 = arith.negf %475 : vector<2x32xf32>
    %477 = math.exp %476 : vector<2x32xf32>
    %cst_109 = arith.constant 1.000000e+00 : f32
    %478 = vector.broadcast %cst_109 : f32 to vector<2x32xf32>
    %479 = arith.addf %478, %477 : vector<2x32xf32>
    %480 = arith.divf %478, %479 : vector<2x32xf32>
    %481 = vector.extract_strided_slice %468 {offsets = [0, 64], sizes = [2, 32], strides = [1, 1]} : vector<2x128xf32> to vector<2x32xf32>
    %482 = math.tanh %481 : vector<2x32xf32>
    %483 = vector.extract_strided_slice %468 {offsets = [0, 96], sizes = [2, 32], strides = [1, 1]} : vector<2x128xf32> to vector<2x32xf32>
    %484 = arith.negf %483 : vector<2x32xf32>
    %485 = math.exp %484 : vector<2x32xf32>
    %cst_110 = arith.constant 1.000000e+00 : f32
    %486 = vector.broadcast %cst_110 : f32 to vector<2x32xf32>
    %487 = arith.addf %486, %485 : vector<2x32xf32>
    %488 = arith.divf %486, %487 : vector<2x32xf32>
    %489 = arith.mulf %480, %462 : vector<2x32xf32>
    %490 = arith.mulf %474, %482 : vector<2x32xf32>
    %491 = arith.addf %489, %490 : vector<2x32xf32>
    %492 = math.tanh %491 : vector<2x32xf32>
    %493 = arith.mulf %488, %492 : vector<2x32xf32>
    %c0_111 = arith.constant 0 : index
    %c0_112 = arith.constant 0 : index
    %494 = vector.load %arg7[%c0_111, %c0_112] : memref<32x5xf32, #tpu.memory_space<vmem>>, vector<32x5xf32>
    %cst_113 = arith.constant dense<0.000000e+00> : vector<2x5xf32>
    %495 = tpu.matmul %493, %494, %cst_113 {dimension_numbers = #tpu.dot_dimension_numbers<[1], [0], [0], [1], [0, 0, 1, 1], [], []>} : vector<2x32xf32>, vector<32x5xf32>, vector<2x5xf32> -> vector<2x5xf32>
    %c0_114 = arith.constant 0 : index
    %c0_115 = arith.constant 0 : index
    %496 = vector.load %arg8[%c0_114, %c0_115] : memref<1x5xf32, #tpu.memory_space<vmem>>, vector<1x5xf32>
    %497 = vector.broadcast %496 : vector<1x5xf32> to vector<2x5xf32>
    %498 = arith.addf %495, %497 : vector<2x5xf32>
    %c0_116 = arith.constant 0 : index
    %c0_117 = arith.constant 0 : index
    %499 = vector.load %arg9[%c0_116, %c0_117] : memref<2x5xf32, #tpu.memory_space<vmem>>, vector<2x5xf32>
    tpu.vector_store %arg9[%c0_116, %c0_117], %498 {strides = array<i32>} : memref<2x5xf32, #tpu.memory_space<vmem>>, vector<2x5xf32>,
    return
  }
}

</mosaic_0001>

<bundles_post_ra>
// kernel: rnn_forward.1
= control target key start
LH: loop header
LB: loop body
LE: loop exit
PB: predicated region body
PF: predicated region fallthrough
CT: control target
= control target key end

     0   :  { %14 = vsyncpa [#allocation3], 0  ;;  %s4377_s0 = inlined_call_operand.vmem [shape: f32[8,2,12], index: 0, kind: input, shape index: {}]   ;;  %s4378_s1 = inlined_call_operand.hbm [shape: f32[12,128], index: 1, kind: input, shape index: {}]   ;;  %s4379_s2 = inlined_call_operand.vmem [shape: f32[32,128], index: 2, kind: input, shape index: {}]   ;;  %s4380_s3 = inlined_call_operand.vmem [shape: f32[1,128], index: 3, kind: input, shape index: {}]   ;;  %s4381_s4 = inlined_call_operand.vmem [shape: f32[32,128], index: 4, kind: input, shape index: {}]   ;;  %s4382_s5 = inlined_call_operand.hbm [shape: f32[32,128], index: 5, kind: input, shape index: {}]   ;;  %s4383_s6 = inlined_call_operand.vmem [shape: f32[1,128], index: 6, kind: input, shape index: {}]   ;;  %s4384_s7 = inlined_call_operand.vmem [shape: f32[32,5], index: 7, kind: input, shape index: {}]   ;;  %s4385_s8 = inlined_call_operand.hbm [shape: f32[1,5], index: 8, kind: input, shape index: {}]   ;;  %s4386_s9 = inlined_call_operand.hbm [shape: f32[2,5], index: 9, kind: output, shape index: {}]  }
   0x1   :  { %15 = vsyncpa [#allocation6], 0 }
   0x2   :  { %16 = vsyncpa [#allocation4], 0  ;;  %s3737_s30 = smov [#allocation5]   ;;  %s3738_s11 = smov [#allocation2]  }
   0x3   :  { %s42_s10 = sshll.u32 %s3737_s30, 4  ;;  %s24_s12 = sshll.u32 %s3738_s11, 4  ;;  %s43_s10 = int_to_ptr.vmem [resolvable:$true] %s42_s10  ;;  %s25_s12 = int_to_ptr.vmem [resolvable:$true] %s24_s12 }
   0x4   :  { %s3659_s13 = scalar_lea.vmem %s43_s10, 512  ;;  %p3664_p1 = scmp.lt.s32.totalorder %s43_s10, %s43_s10 }
   0x5   :  { %p3660_p0 = scmp.ne.s32.totalorder %s43_s10, %s3659_s13  ;;  %p3665_p2 = scmp.lt.s32.totalorder %s3659_s13, %s3659_s13 }
   0x7   :  { %p3666_p3 = por %p3665_p2, %p3664_p1 }
   0x9   :  { %p3667_p4 = pnand %p3666_p3, %p3660_p0 }
   0xb   :  { %3670 = shalt.err (!%p3667_p4)
}
   0xc   :  { %s3739_s14 = smov 128   ;;  %s3740_s15 = smov 8  }
   0xd   :  { %48 = dma.hbm_to_vmem [thread:$0]  %s4382_s5, 512, %s43_s10, [#allocation6], %s3739_s14, %s3739_s14, %s3740_s15  }
   0xe   :  { %s3679_s18 = scalar_lea.vmem %s25_s12, 256  ;;  %p3684_p6 = scmp.lt.s32.totalorder %s25_s12, %s25_s12 }
   0xf   :  { %p3680_p5 = scmp.ne.s32.totalorder %s25_s12, %s3679_s18  ;;  %p3685_p7 = scmp.lt.s32.totalorder %s3679_s18, %s3679_s18 }
  0x11   :  { %p3686_p8 = por %p3685_p7, %p3684_p6 }
  0x13   :  { %p3687_p9 = pnand %p3686_p8, %p3680_p5 }
  0x15   :  { %3690 = shalt.err (!%p3687_p9)
}
  0x16   :  { %30 = dma.hbm_to_vmem [thread:$0]  %s4378_s1, 256, %s25_s12, [#allocation3], %s3739_s14, %s3739_s14, %s3740_s15  }
  0x17   :  { %s3741_s21 = smov [#allocation7]  }
  0x18   :  { %s59_s22 = sshll.u32 %s3741_s21, 4  ;;  %s60_s22 = int_to_ptr.vmem [resolvable:$true] %s59_s22 }
  0x19   :  { %s3699_s23 = scalar_lea.vmem %s60_s22, 16  ;;  %s3703_s24 = scalar_lea.vmem %s60_s22, 32 }
  0x1a   :  { %p3700_p10 = scmp.ne.s32.totalorder %s60_s22, %s3699_s23  ;;  %p3704_p11 = scmp.lt.s32.totalorder %s60_s22, %s60_s22 }
  0x1b   :  { %p3705_p12 = scmp.lt.s32.totalorder %s3703_s24, %s3699_s23 }
  0x1d   :  { %p3706_p13 = por %p3705_p12, %p3704_p11 }
  0x1f   :  { %p3707_p0 = pnand %p3706_p13, %p3700_p10 }
  0x21   :  { %3710 = shalt.err (!%p3707_p0)
}
  0x22   :  { %62 = dma.hbm_to_vmem [thread:$0]  %s4385_s8, 16, %s60_s22, [#allocation6]  }
  0x23   :  { %3731 = dma.done.wait [#allocation3], 256  }
  0x24   :  { %3732 = vsyncadd [#allocation3], 4294967040 }
  0x25   :  { %3733 = dma.done.wait [#allocation6], 528  }
  0x26   :  { %3734 = vsyncadd [#allocation6], 4294966768  ;;  %v3742_v0 = vmov 0.0   ;;  %vm3743_vm0 = vmmov 0   ;;  %vm164_vm1 = vcmask 1043456   ;;  %v3815_v1 = vld [vmem:[%s4379_s2 + $0x18] sm:$0xff] }
  0x27   :  { %3181 = vmatprep.subr.mxu0 %v3742_v0  ;;  %3192 = vmatprep.subr.mxu1 %v3742_v0  ;;  %v3820_v2 = vld [vmem:[%s4379_s2 + $0x10] sm:$0xff]  ;;  %v3822_v3 = vld [vmem:[#allocation2 + $0x8] sm:$0xf]  ;;  %v3827_v4 = vld [vmem:[#allocation2] sm:$0xff]  ;;  %vm160_vm2 = vcmask 97280   ;;  %s3744_s14 = smov 64  }
  0x28   :  { %3196 = vmatprep.mubr.msk.f32.mxu1 %vm3743_vm0, %v3742_v0  ;;  %3189 = vmatprep.mubr.msk.f32.mxu0 %vm3743_vm0, %v3742_v0  ;;  %v85_v5 = vld [vmem:[%s4377_s0] sm:$0x3]  ;;  %v3837_v6 = vld [vmem:[%s4379_s2 + $0x8] sm:$0xff]  ;;  %s3745_s15 = smov 32   ;;  %vm86_vm3 = vcmask 261120   ;;  %s3746_s23 = smov [#allocation8]  }
  0x29   :  { %3182 = vmatpush3.msra.mxu0 %v3815_v1  ;;  %3193 = vmatpush3.msk.msra.mxu1 %vm164_vm1, %v3822_v3  ;;  %v3846_v7 = vld [vmem:[%s4379_s2] sm:$0xff]  ;;  %s2957_s24 = sshll.u32 %s3746_s23, 4  ;;  %vm2949_vm4 = vcmask 33792   ;;  %s2958_s24 = int_to_ptr.vmem [resolvable:$true] %s2957_s24 }
  0x2a   :  { %3183 = vmatprep.subr.mxu0 %v3742_v0  ;;  %3194 = vmatprep.subr.mxu1 %v3742_v0  ;;  %v3877_v10 = vld [vmem:[%s4380_s3] ss:$0 sm:$0xff]  ;;  %v2971_v29 = vld [vmem:[%s4377_s0 + $0x2] sm:$0x3]  ;;  %v2976_v46 = vld [vmem:[%s4377_s0 + $0x4] sm:$0x3]  ;;  %p3716_p2 = scmp.lt.s32.totalorder %s2958_s24, %s2958_s24 }
  0x2b   :  { %3184 = vmatpush3.msra.mxu0 %v3820_v2  ;;  %3195 = vmatpush3.msra.mxu1 %v3827_v4 }
  0x2c   :  { %3185 = vmatprep.subr.mxu0 %v3742_v0  ;;  %3197 = vmatmul.mubr.msk.f32.vlgmr.msra.gmra.mxu1 %vm160_vm2, %v85_v5 }
  0x2d   :  { %3186 = vmatpush3.msra.mxu0 %v3837_v6  ;;  %3199 = vmatprep.subr.mxu1 %v3742_v0 }
  0x2e   :  { %3187 = vmatprep.subr.mxu0 %v3742_v0  ;;  %3200 = vmatpush3.msra.mxu1 %v3815_v1 }
  0x2f   :  { %3188 = vmatpush3.msra.mxu0 %v3846_v7  ;;  %3201 = vmatprep.subr.mxu1 %v3742_v0 }
  0x30   :  { %3190 = vmatmul.mubr.f32.vlgmr.msra.gmra.mxu0 %v3742_v0  ;;  %3202 = vmatpush3.msra.mxu1 %v3820_v2 }
  0x31   :  { %3203 = vmatprep.subr.mxu1 %v3742_v0  ;;  %3207 = vmatprep.mubr.msk.f32.mxu1 %vm3743_vm0, %v3742_v0 }
  0x32   :  { %3204 = vmatpush3.msra.mxu1 %v3837_v6  ;;  %3217 = vmatprep.subr.mxu0 %v3742_v0 }
  0x33   :  { %3205 = vmatprep.subr.mxu1 %v3742_v0  ;;  %3218 = vmatpush3.msra.mxu0 %v3815_v1 }
  0x34   :  { %3206 = vmatpush3.msra.mxu1 %v3846_v7  ;;  %3219 = vmatprep.subr.mxu0 %v3742_v0 }
  0x35   :  { %3210 = vmatprep.subr.mxu1 %v3742_v0  ;;  %3220 = vmatpush3.msra.mxu0 %v3820_v2 }
  0x36   :  { %3221 = vmatprep.subr.mxu0 %v3742_v0  ;;  %3225 = vmatprep.mubr.msk.f32.mxu0 %vm3743_vm0, %v3742_v0 }
  0x37   :  { %3222 = vmatpush3.msra.mxu0 %v3837_v6 }
  0x38   :  { %3223 = vmatprep.subr.mxu0 %v3742_v0 }
  0x39   :  { %3224 = vmatpush3.msra.mxu0 %v3846_v7 }
  0x3a   :  { %3246 = vmatprep.subr.mxu0 %v3742_v0 }
  0xec   :  { %v234_v8 = vpop.f32.mrf.mxu1 }
  0xee   :  { %v3198_v9 = vpop.f32.mrf.mxu1 }
  0xf0   :  { %v156_v11 = vpop.f32.mrf.mxu0 }
  0xf1   :  { %v235_v12 = vadd.f32 %v234_v8, %v156_v11  ;;  %v2981_v11 = vld [vmem:[%s4377_s0 + $0x6] sm:$0x3] }
  0xf2   :  { %v3191_v13 = vpop.f32.mrf.mxu0 }
  0xf3   :  { %v238_v14 = vadd.f32 %v3877_v10, %v235_v12 }
  0xf5   :  { %3522 = vtanh.f32 %v238_v14  ;;  %v2970_v16 = vmul.f32 -1.442695, %v238_v14 }
  0xf7   :  { %3524 = vpow2.f32 %v2970_v16 }
 0x102   :  { %v3523_v15 = vpop.eup %3522 }
 0x103   :  { %248 = vrot.lane.b32.xlu0 %v3523_v15, %s3744_s14 }
 0x104   :  { %v3525_v17 = vpop.eup %3524 }
 0x105   :  { %v242_v18 = vadd.f32 1.0, %v3525_v17 }
 0x107   :  { %3526 = vrcp.f32 %v242_v18 }
 0x114   :  { %v3527_v19 = vpop.eup %3526 }
 0x115   :  { %v246_v22 = vmul.f32 0.0, %v3527_v19 }
 0x175   :  { %v249_v20 = vpop.permute.xlu0 %248 }
 0x176   :  { %v251_v21 = vmul.f32 %v3527_v19, %v249_v20 }
 0x178   :  { %253 = vrot.lane.b32.xlu0 %v251_v21, %s3745_s15 }
 0x1ea   :  { %v254_v23 = vpop.permute.xlu0 %253 }
 0x1eb   :  { %v256_v24 = vadd.f32 %v254_v23, %v246_v22 }
 0x1ed   :  { %3528 = vtanh.f32 %v256_v24 }
 0x1fa   :  { %v3529_v25 = vpop.eup %3528 }
 0x1fb   :  { %259 = vrot.lane.b32.xlu1 %v3529_v25, %s3744_s14 }
 0x26d   :  { %v260_v26 = vpop.permute.xlu1 %259 }
 0x26e   :  { %v262_v27 = vmul.f32 %v3527_v19, %v260_v26 }
 0x270   :  { %266 = vrot.lane.b32.xlu1 %v262_v27, %s3745_s15 }
 0x2e2   :  { %v3884_v28 = vpop.permute.xlu1 %266 }
 0x2e3   :  { %3208 = vmatmul.mubr.msk.f32.vlgmr.msra.gmra.mxu1 %vm86_vm3, %v3884_v28 }
 0x2e4   :  { %3211 = vmatpush3.msk.msra.mxu1 %vm164_vm1, %v3822_v3  ;;  %3214 = vmatprep.mubr.msk.f32.mxu1 %vm3743_vm0, %v3742_v0 }
 0x2e5   :  { %3212 = vmatprep.subr.mxu1 %v3742_v0 }
 0x2e6   :  { %3213 = vmatpush3.msra.mxu1 %v3827_v4 }
 0x2e7   :  { %3215 = vmatmul.mubr.msk.f32.vlgmr.msra.gmra.mxu1 %vm160_vm2, %v2971_v29  ;;  %3228 = vmatprep.subr.mxu1 %v3742_v0 }
 0x2e8   :  { %3229 = vmatpush3.msk.msra.mxu1 %vm164_vm1, %v3822_v3  ;;  %3232 = vmatprep.mubr.msk.f32.mxu1 %vm3743_vm0, %v3742_v0 }
 0x2e9   :  { %3230 = vmatprep.subr.mxu1 %v3742_v0 }
 0x2ea   :  { %3231 = vmatpush3.msra.mxu1 %v3827_v4 }
 0x2eb   :  { %3235 = vmatprep.subr.mxu1 %v3742_v0  ;;  %3233 = vmatmul.mubr.msk.f32.vlgmr.msra.gmra.mxu1 %vm160_vm2, %v2976_v46 }
 0x2ec   :  { %3236 = vmatpush3.msra.mxu1 %v3815_v1  ;;  %3243 = vmatprep.mubr.msk.f32.mxu1 %vm3743_vm0, %v3742_v0 }
 0x2ed   :  { %3237 = vmatprep.subr.mxu1 %v3742_v0 }
 0x2ee   :  { %3238 = vmatpush3.msra.mxu1 %v3820_v2 }
 0x2ef   :  { %3239 = vmatprep.subr.mxu1 %v3742_v0 }
 0x2f0   :  { %3240 = vmatpush3.msra.mxu1 %v3837_v6 }
 0x2f1   :  { %3241 = vmatprep.subr.mxu1 %v3742_v0 }
 0x2f2   :  { %3242 = vmatpush3.msra.mxu1 %v3846_v7 }
 0x2f3   :  { %3264 = vmatprep.subr.mxu1 %v3742_v0 }
 0x3a3   :  { %v336_v30 = vpop.f32.mrf.mxu1 }
 0x3a5   :  { %v3209_v31 = vpop.f32.mrf.mxu1 }
 0x3a7   :  { %v409_v32 = vpop.f32.mrf.mxu1 }
 0x3a8   :  { %v410_v33 = vadd.f32 %v409_v32, %v336_v30 }
 0x3a9   :  { %v3216_v34 = vpop.f32.mrf.mxu1 }
 0x3aa   :  { %v413_v35 = vadd.f32 %v3877_v10, %v410_v33  ;;  %v2986_v33 = vld [vmem:[%s4377_s0 + $0x8] sm:$0x3] }
 0x3ab   :  { %v584_v50 = vpop.f32.mrf.mxu1 }
 0x3ac   :  { %3530 = vtanh.f32 %v413_v35  ;;  %v2975_v37 = vmul.f32 -1.442695, %v413_v35 }
 0x3ad   :  { %v3234_v51 = vpop.f32.mrf.mxu1 }
 0x3ae   :  { %3532 = vpow2.f32 %v2975_v37 }
 0x3b9   :  { %v3531_v36 = vpop.eup %3530 }
 0x3ba   :  { %423 = vrot.lane.b32.xlu0 %v3531_v36, %s3744_s14 }
 0x3bb   :  { %v3533_v38 = vpop.eup %3532 }
 0x3bc   :  { %v417_v39 = vadd.f32 1.0, %v3533_v38 }
 0x3be   :  { %3534 = vrcp.f32 %v417_v39 }
 0x3cb   :  { %v3535_v40 = vpop.eup %3534 }
 0x3cc   :  { %v421_v43 = vmul.f32 %v3535_v40, %v256_v24 }
 0x42c   :  { %v424_v41 = vpop.permute.xlu0 %423 }
 0x42d   :  { %v426_v42 = vmul.f32 %v3535_v40, %v424_v41 }
 0x42f   :  { %428 = vrot.lane.b32.xlu1 %v426_v42, %s3745_s15 }
 0x4a1   :  { %v429_v44 = vpop.permute.xlu1 %428 }
 0x4a2   :  { %v431_v45 = vadd.f32 %v429_v44, %v421_v43 }
 0x4a4   :  { %3536 = vtanh.f32 %v431_v45 }
 0x4b1   :  { %v3537_v47 = vpop.eup %3536 }
 0x4b2   :  { %434 = vrot.lane.b32.xlu0 %v3537_v47, %s3744_s14 }
 0x524   :  { %v435_v48 = vpop.permute.xlu0 %434 }
 0x525   :  { %v437_v49 = vmul.f32 %v3535_v40, %v435_v48 }
 0x527   :  { %441 = vrot.lane.b32.xlu1 %v437_v49, %s3745_s15 }
 0x599   :  { %v3925_v52 = vpop.permute.xlu1 %441 }
 0x59a   :  { %3226 = vmatmul.mubr.msk.f32.vlgmr.msra.gmra.mxu0 %vm86_vm3, %v3925_v52 }
 0x59b   :  { %3247 = vmatpush3.msk.msra.mxu0 %vm164_vm1, %v3822_v3  ;;  %3250 = vmatprep.mubr.msk.f32.mxu0 %vm3743_vm0, %v3742_v0 }
 0x59c   :  { %3248 = vmatprep.subr.mxu0 %v3742_v0 }
 0x59d   :  { %3249 = vmatpush3.msra.mxu0 %v3827_v4 }
 0x59e   :  { %3253 = vmatprep.subr.mxu0 %v3742_v0  ;;  %3251 = vmatmul.mubr.msk.f32.vlgmr.msra.gmra.mxu0 %vm160_vm2, %v2981_v11 }
 0x59f   :  { %3254 = vmatpush3.msra.mxu0 %v3815_v1  ;;  %3261 = vmatprep.mubr.msk.f32.mxu0 %vm3743_vm0, %v3742_v0 }
 0x5a0   :  { %3255 = vmatprep.subr.mxu0 %v3742_v0 }
 0x5a1   :  { %3256 = vmatpush3.msra.mxu0 %v3820_v2 }
 0x5a2   :  { %3257 = vmatprep.subr.mxu0 %v3742_v0 }
 0x5a3   :  { %3258 = vmatpush3.msra.mxu0 %v3837_v6 }
 0x5a4   :  { %3259 = vmatprep.subr.mxu0 %v3742_v0 }
 0x5a5   :  { %3260 = vmatpush3.msra.mxu0 %v3846_v7 }
 0x5a6   :  { %3282 = vmatprep.subr.mxu0 %v3742_v0 }
 0x65a   :  { %v511_v53 = vpop.f32.mrf.mxu0 }
 0x65b   :  { %v585_v54 = vadd.f32 %v584_v50, %v511_v53 }
 0x65c   :  { %v3227_v55 = vpop.f32.mrf.mxu0 }
 0x65d   :  { %v588_v56 = vadd.f32 %v3877_v10, %v585_v54  ;;  %v2991_v55 = vld [vmem:[%s4377_s0 + $0xa] sm:$0x3] }
 0x65e   :  { %v759_v15 = vpop.f32.mrf.mxu0 }
 0x65f   :  { %3538 = vtanh.f32 %v588_v56  ;;  %v2980_v58 = vmul.f32 -1.442695, %v588_v56 }
 0x660   :  { %v3252_v16 = vpop.f32.mrf.mxu0 }
 0x661   :  { %3540 = vpow2.f32 %v2980_v58 }
 0x66c   :  { %v3539_v57 = vpop.eup %3538 }
 0x66d   :  { %598 = vrot.lane.b32.xlu0 %v3539_v57, %s3744_s14 }
 0x66e   :  { %v3541_v59 = vpop.eup %3540 }
 0x66f   :  { %v592_v60 = vadd.f32 1.0, %v3541_v59 }
 0x671   :  { %3542 = vrcp.f32 %v592_v60 }
 0x67e   :  { %v3543_v61 = vpop.eup %3542 }
 0x67f   :  { %v596_v5 = vmul.f32 %v3543_v61, %v431_v45 }
 0x6df   :  { %v599_v62 = vpop.permute.xlu0 %598 }
 0x6e0   :  { %v601_v63 = vmul.f32 %v3543_v61, %v599_v62 }
 0x6e2   :  { %603 = vrot.lane.b32.xlu1 %v601_v63, %s3745_s15 }
 0x754   :  { %v604_v8 = vpop.permute.xlu1 %603 }
 0x755   :  { %v606_v9 = vadd.f32 %v604_v8, %v596_v5 }
 0x757   :  { %3544 = vtanh.f32 %v606_v9 }
 0x764   :  { %v3545_v12 = vpop.eup %3544 }
 0x765   :  { %609 = vrot.lane.b32.xlu0 %v3545_v12, %s3744_s14 }
 0x7d7   :  { %v610_v13 = vpop.permute.xlu0 %609 }
 0x7d8   :  { %v612_v14 = vmul.f32 %v3543_v61, %v610_v13 }
 0x7da   :  { %616 = vrot.lane.b32.xlu1 %v612_v14, %s3745_s15 }
 0x84c   :  { %v3955_v17 = vpop.permute.xlu1 %616 }
 0x84d   :  { %3244 = vmatmul.mubr.msk.f32.vlgmr.msra.gmra.mxu1 %vm86_vm3, %v3955_v17 }
 0x84e   :  { %3265 = vmatpush3.msk.msra.mxu1 %vm164_vm1, %v3822_v3  ;;  %3268 = vmatprep.mubr.msk.f32.mxu1 %vm3743_vm0, %v3742_v0 }
 0x84f   :  { %3266 = vmatprep.subr.mxu1 %v3742_v0 }
 0x850   :  { %3267 = vmatpush3.msra.mxu1 %v3827_v4 }
 0x851   :  { %3271 = vmatprep.subr.mxu1 %v3742_v0  ;;  %3269 = vmatmul.mubr.msk.f32.vlgmr.msra.gmra.mxu1 %vm160_vm2, %v2986_v33 }
 0x852   :  { %3272 = vmatpush3.msra.mxu1 %v3815_v1  ;;  %3279 = vmatprep.mubr.msk.f32.mxu1 %vm3743_vm0, %v3742_v0 }
 0x853   :  { %3273 = vmatprep.subr.mxu1 %v3742_v0 }
 0x854   :  { %3274 = vmatpush3.msra.mxu1 %v3820_v2 }
 0x855   :  { %3275 = vmatprep.subr.mxu1 %v3742_v0 }
 0x856   :  { %3276 = vmatpush3.msra.mxu1 %v3837_v6 }
 0x857   :  { %3277 = vmatprep.subr.mxu1 %v3742_v0 }
 0x858   :  { %3278 = vmatpush3.msra.mxu1 %v3846_v7 }
 0x859   :  { %3300 = vmatprep.subr.mxu1 %v3742_v0 }
 0x90d   :  { %v686_v18 = vpop.f32.mrf.mxu1 }
 0x90e   :  { %v760_v19 = vadd.f32 %v759_v15, %v686_v18 }
 0x90f   :  { %v3245_v20 = vpop.f32.mrf.mxu1 }
 0x910   :  { %v763_v21 = vadd.f32 %v3877_v10, %v760_v19 }
 0x911   :  { %v934_v37 = vpop.f32.mrf.mxu1 }
 0x912   :  { %3546 = vtanh.f32 %v763_v21  ;;  %v2985_v23 = vmul.f32 -1.442695, %v763_v21  ;;  %v2996_v21 = vld [vmem:[%s4377_s0 + $0xc] sm:$0x3] }
 0x913   :  { %v3270_v38 = vpop.f32.mrf.mxu1 }
 0x914   :  { %3548 = vpow2.f32 %v2985_v23 }
 0x91f   :  { %v3547_v22 = vpop.eup %3546 }
 0x920   :  { %773 = vrot.lane.b32.xlu0 %v3547_v22, %s3744_s14 }
 0x921   :  { %v3549_v24 = vpop.eup %3548 }
 0x922   :  { %v767_v25 = vadd.f32 1.0, %v3549_v24 }
 0x924   :  { %3550 = vrcp.f32 %v767_v25 }
 0x931   :  { %v3551_v26 = vpop.eup %3550 }
 0x932   :  { %v771_v30 = vmul.f32 %v3551_v26, %v606_v9 }
 0x992   :  { %v774_v27 = vpop.permute.xlu0 %773 }
 0x993   :  { %v776_v29 = vmul.f32 %v3551_v26, %v774_v27 }
 0x995   :  { %778 = vrot.lane.b32.xlu1 %v776_v29, %s3745_s15 }
 0xa07   :  { %v779_v31 = vpop.permute.xlu1 %778 }
 0xa08   :  { %v781_v32 = vadd.f32 %v779_v31, %v771_v30 }
 0xa0a   :  { %3552 = vtanh.f32 %v781_v32 }
 0xa17   :  { %v3553_v34 = vpop.eup %3552 }
 0xa18   :  { %784 = vrot.lane.b32.xlu0 %v3553_v34, %s3744_s14 }
 0xa8a   :  { %v785_v35 = vpop.permute.xlu0 %784 }
 0xa8b   :  { %v787_v36 = vmul.f32 %v3551_v26, %v785_v35 }
 0xa8d   :  { %791 = vrot.lane.b32.xlu1 %v787_v36, %s3745_s15 }
 0xaff   :  { %v3985_v39 = vpop.permute.xlu1 %791 }
 0xb00   :  { %3262 = vmatmul.mubr.msk.f32.vlgmr.msra.gmra.mxu0 %vm86_vm3, %v3985_v39 }
 0xb01   :  { %3283 = vmatpush3.msk.msra.mxu0 %vm164_vm1, %v3822_v3  ;;  %3286 = vmatprep.mubr.msk.f32.mxu0 %vm3743_vm0, %v3742_v0 }
 0xb02   :  { %3284 = vmatprep.subr.mxu0 %v3742_v0 }
 0xb03   :  { %3285 = vmatpush3.msra.mxu0 %v3827_v4 }
 0xb04   :  { %3289 = vmatprep.subr.mxu0 %v3742_v0  ;;  %3287 = vmatmul.mubr.msk.f32.vlgmr.msra.gmra.mxu0 %vm160_vm2, %v2991_v55 }
 0xb05   :  { %3290 = vmatpush3.msra.mxu0 %v3815_v1  ;;  %3297 = vmatprep.mubr.msk.f32.mxu0 %vm3743_vm0, %v3742_v0 }
 0xb06   :  { %3291 = vmatprep.subr.mxu0 %v3742_v0 }
 0xb07   :  { %3292 = vmatpush3.msra.mxu0 %v3820_v2 }
 0xb08   :  { %3293 = vmatprep.subr.mxu0 %v3742_v0 }
 0xb09   :  { %3294 = vmatpush3.msra.mxu0 %v3837_v6 }
 0xb0a   :  { %3295 = vmatprep.subr.mxu0 %v3742_v0 }
 0xb0b   :  { %3296 = vmatpush3.msra.mxu0 %v3846_v7 }
 0xb0c   :  { %3318 = vmatprep.subr.mxu0 %v3742_v0 }
 0xbc0   :  { %v861_v40 = vpop.f32.mrf.mxu0 }
 0xbc1   :  { %v935_v41 = vadd.f32 %v934_v37, %v861_v40  ;;  %v4065_v37 = vld [vmem:[#allocation5 + $0x18] sm:$0xff]  ;;  %v4073_v40 = vld [vmem:[#allocation5 + $0x10] sm:$0xff] }
 0xbc2   :  { %v3263_v42 = vpop.f32.mrf.mxu0 }
 0xbc3   :  { %v938_v43 = vadd.f32 %v3877_v10, %v935_v41  ;;  %v4077_v41 = vld [vmem:[#allocation5 + $0x8] sm:$0xff]  ;;  %v4081_v42 = vld [vmem:[#allocation5] sm:$0xff] }
 0xbc4   :  { %v1109_v59 = vpop.f32.mrf.mxu0 }
 0xbc5   :  { %3554 = vtanh.f32 %v938_v43  ;;  %v2990_v45 = vmul.f32 -1.442695, %v938_v43 }
 0xbc6   :  { %v3288_v60 = vpop.f32.mrf.mxu0 }
 0xbc7   :  { %3556 = vpow2.f32 %v2990_v45 }
 0xbd2   :  { %v3555_v44 = vpop.eup %3554 }
 0xbd3   :  { %948 = vrot.lane.b32.xlu0 %v3555_v44, %s3744_s14 }
 0xbd4   :  { %v3557_v46 = vpop.eup %3556 }
 0xbd5   :  { %v942_v47 = vadd.f32 1.0, %v3557_v46 }
 0xbd7   :  { %3558 = vrcp.f32 %v942_v47  ;;  %v4102_v47 = vld [vmem:[%s4381_s4 + $0x18] sm:$0xff] }
 0xbe4   :  { %v3559_v48 = vpop.eup %3558 }
 0xbe5   :  { %v946_v51 = vmul.f32 %v3559_v48, %v781_v32 }
 0xc45   :  { %v949_v49 = vpop.permute.xlu0 %948 }
 0xc46   :  { %v951_v50 = vmul.f32 %v3559_v48, %v949_v49  ;;  %v4111_v49 = vld [vmem:[%s4381_s4 + $0x10] sm:$0xff] }
 0xc48   :  { %953 = vrot.lane.b32.xlu1 %v951_v50, %s3745_s15  ;;  %v4120_v50 = vld [vmem:[%s4381_s4 + $0x8] sm:$0xff] }
 0xcba   :  { %v954_v53 = vpop.permute.xlu1 %953 }
 0xcbb   :  { %v956_v54 = vadd.f32 %v954_v53, %v946_v51  ;;  %v4127_v51 = vld [vmem:[%s4381_s4] sm:$0xff] }
 0xcbc   :  { %v4221_v53 = vld [vmem:[%s4383_s6] ss:$0 sm:$0xff] }
 0xcbd   :  { %3560 = vtanh.f32 %v956_v54 }
 0xcca   :  { %v3561_v56 = vpop.eup %3560 }
 0xccb   :  { %959 = vrot.lane.b32.xlu0 %v3561_v56, %s3744_s14 }
 0xd3d   :  { %v960_v57 = vpop.permute.xlu0 %959 }
 0xd3e   :  { %v962_v58 = vmul.f32 %v3559_v48, %v960_v57 }
 0xd40   :  { %966 = vrot.lane.b32.xlu1 %v962_v58, %s3745_s15 }
 0xdb2   :  { %v4015_v61 = vpop.permute.xlu1 %966 }
 0xdb3   :  { %3280 = vmatmul.mubr.msk.f32.vlgmr.msra.gmra.mxu1 %vm86_vm3, %v4015_v61 }
 0xdb4   :  { %3301 = vmatpush3.msk.msra.mxu1 %vm164_vm1, %v3822_v3  ;;  %3304 = vmatprep.mubr.msk.f32.mxu1 %vm3743_vm0, %v3742_v0 }
 0xdb5   :  { %3302 = vmatprep.subr.mxu1 %v3742_v0 }
 0xdb6   :  { %3303 = vmatpush3.msra.mxu1 %v3827_v4 }
 0xdb7   :  { %3307 = vmatprep.subr.mxu1 %v3742_v0  ;;  %3305 = vmatmul.mubr.msk.f32.vlgmr.msra.gmra.mxu1 %vm160_vm2, %v2996_v21 }
 0xdb8   :  { %3308 = vmatpush3.msra.mxu1 %v3815_v1  ;;  %3315 = vmatprep.mubr.msk.f32.mxu1 %vm3743_vm0, %v3742_v0 }
 0xdb9   :  { %3309 = vmatprep.subr.mxu1 %v3742_v0 }
 0xdba   :  { %3310 = vmatpush3.msra.mxu1 %v3820_v2 }
 0xdbb   :  { %3311 = vmatprep.subr.mxu1 %v3742_v0 }
 0xdbc   :  { %3312 = vmatpush3.msra.mxu1 %v3837_v6 }
 0xdbd   :  { %3313 = vmatprep.subr.mxu1 %v3742_v0 }
 0xdbe   :  { %3314 = vmatpush3.msra.mxu1 %v3846_v7 }
 0xdbf   :  { %3336 = vmatprep.subr.mxu1 %v3742_v0 }
 0xe73   :  { %v1036_v62 = vpop.f32.mrf.mxu1 }
 0xe74   :  { %v1110_v63 = vadd.f32 %v1109_v59, %v1036_v62 }
 0xe75   :  { %v3281_v5 = vpop.f32.mrf.mxu1 }
 0xe76   :  { %v1113_v8 = vadd.f32 %v3877_v10, %v1110_v63 }
 0xe77   :  { %v1284_v24 = vpop.f32.mrf.mxu1 }
 0xe78   :  { %3562 = vtanh.f32 %v1113_v8  ;;  %v2995_v11 = vmul.f32 -1.442695, %v1113_v8 }
 0xe79   :  { %v3306_v25 = vpop.f32.mrf.mxu1 }
 0xe7a   :  { %3564 = vpow2.f32 %v2995_v11 }
 0xe85   :  { %v3563_v9 = vpop.eup %3562 }
 0xe86   :  { %1123 = vrot.lane.b32.xlu0 %v3563_v9, %s3744_s14 }
 0xe87   :  { %v3565_v12 = vpop.eup %3564 }
 0xe88   :  { %v1117_v13 = vadd.f32 1.0, %v3565_v12 }
 0xe8a   :  { %3566 = vrcp.f32 %v1117_v13 }
 0xe97   :  { %v3567_v14 = vpop.eup %3566 }
 0xe98   :  { %v1121_v18 = vmul.f32 %v3567_v14, %v956_v54 }
 0xef8   :  { %v1124_v15 = vpop.permute.xlu0 %1123 }
 0xef9   :  { %v1126_v16 = vmul.f32 %v3567_v14, %v1124_v15 }
 0xefb   :  { %1128 = vrot.lane.b32.xlu1 %v1126_v16, %s3745_s15 }
 0xf6d   :  { %v1129_v19 = vpop.permute.xlu1 %1128 }
 0xf6e   :  { %v1131_v20 = vadd.f32 %v1129_v19, %v1121_v18 }
 0xf70   :  { %3568 = vtanh.f32 %v1131_v20 }
 0xf7d   :  { %v3569_v22 = vpop.eup %3568 }
 0xf7e   :  { %1134 = vrot.lane.b32.xlu0 %v3569_v22, %s3744_s14 }
 0xff0   :  { %v1135_v1 = vpop.permute.xlu0 %1134 }
 0xff1   :  { %v1137_v23 = vmul.f32 %v3567_v14, %v1135_v1 }
 0xff3   :  { %1141 = vrot.lane.b32.xlu1 %v1137_v23, %s3745_s15 }
0x1065   :  { %v4045_v2 = vpop.permute.xlu1 %1141 }
0x1066   :  { %3298 = vmatmul.mubr.msk.f32.vlgmr.msra.gmra.mxu0 %vm86_vm3, %v4045_v2 }
0x1067   :  { %3319 = vmatpush3.msk.msra.mxu0 %vm164_vm1, %v3822_v3  ;;  %3322 = vmatprep.mubr.msk.f32.mxu0 %vm3743_vm0, %v3742_v0 }
0x1068   :  { %3320 = vmatprep.subr.mxu0 %v3742_v0 }
0x1069   :  { %3321 = vmatpush3.msra.mxu0 %v3827_v4 }
0x106a   :  { %3325 = vmatprep.subr.mxu0 %v3742_v0 }
0x1126   :  { %v1211_v6 = vpop.f32.mrf.mxu0 }
0x1127   :  { %v1285_v7 = vadd.f32 %v1284_v24, %v1211_v6 }
0x1128   :  { %v3299_v26 = vpop.f32.mrf.mxu0 }
0x1129   :  { %v1288_v27 = vadd.f32 %v3877_v10, %v1285_v7  ;;  %v3001_v10 = vld [vmem:[%s4377_s0 + $0xe] sm:$0x3] }
0x112a   :  { %3323 = vmatmul.mubr.msk.f32.vlgmr.msra.gmra.mxu0 %vm160_vm2, %v3001_v10 }
0x112b   :  { %3570 = vtanh.f32 %v1288_v27  ;;  %v3000_v30 = vmul.f32 -1.442695, %v1288_v27  ;;  %3326 = vmatpush3.msra.mxu0 %v4065_v37  ;;  %3333 = vmatprep.mubr.msk.f32.mxu0 %vm3743_vm0, %v3742_v0 }
0x112c   :  { %3327 = vmatprep.subr.mxu0 %v3742_v0 }
0x112d   :  { %3572 = vpow2.f32 %v3000_v30  ;;  %3328 = vmatpush3.msra.mxu0 %v4073_v40 }
0x112e   :  { %3329 = vmatprep.subr.mxu0 %v3742_v0 }
0x112f   :  { %3330 = vmatpush3.msra.mxu0 %v4077_v41 }
0x1130   :  { %3331 = vmatprep.subr.mxu0 %v3742_v0 }
0x1131   :  { %3332 = vmatpush3.msra.mxu0 %v4081_v42 }
0x1132   :  { %3334 = vmatmul.mubr.f32.vlgmr.msra.gmra.mxu0 %v3742_v0  ;;  %3347 = vmatprep.subr.mxu0 %v3742_v0 }
0x1133   :  { %3348 = vmatpush3.msra.mxu0 %v4065_v37  ;;  %3355 = vmatprep.mubr.msk.f32.mxu0 %vm3743_vm0, %v3742_v0 }
0x1134   :  { %3349 = vmatprep.subr.mxu0 %v3742_v0 }
0x1135   :  { %3350 = vmatpush3.msra.mxu0 %v4073_v40 }
0x1136   :  { %3351 = vmatprep.subr.mxu0 %v3742_v0 }
0x1137   :  { %3352 = vmatpush3.msra.mxu0 %v4077_v41 }
0x1138   :  { %v3571_v29 = vpop.eup %3570  ;;  %3353 = vmatprep.subr.mxu0 %v3742_v0 }
0x1139   :  { %1298 = vrot.lane.b32.xlu0 %v3571_v29, %s3744_s14  ;;  %3354 = vmatpush3.msra.mxu0 %v4081_v42 }
0x113a   :  { %v3573_v3 = vpop.eup %3572  ;;  %3369 = vmatprep.subr.mxu0 %v3742_v0 }
0x113b   :  { %v1292_v31 = vadd.f32 1.0, %v3573_v3 }
0x113d   :  { %3574 = vrcp.f32 %v1292_v31 }
0x114a   :  { %v3575_v32 = vpop.eup %3574 }
0x114b   :  { %v1296_v4 = vmul.f32 %v3575_v32, %v1131_v20 }
0x11ab   :  { %v1299_v33 = vpop.permute.xlu0 %1298 }
0x11ac   :  { %v1301_v34 = vmul.f32 %v3575_v32, %v1299_v33 }
0x11ae   :  { %1303 = vrot.lane.b32.xlu1 %v1301_v34, %s3745_s15 }
0x11ea   :  { %v4097_v45 = vpop.f32.mrf.mxu0 }
0x11ec   :  { %v3324_v46 = vpop.f32.mrf.mxu0 }
0x1220   :  { %v1304_v35 = vpop.permute.xlu1 %1303 }
0x1221   :  { %v4059_v36 = vadd.f32 %v1304_v35, %v1296_v4 }
0x1223   :  { %3576 = vtanh.f32 %v4059_v36 }
0x1230   :  { %v3577_v38 = vpop.eup %3576 }
0x1231   :  { %1309 = vrot.lane.b32.xlu0 %v3577_v38, %s3744_s14 }
0x12a3   :  { %v1310_v43 = vpop.permute.xlu0 %1309 }
0x12a4   :  { %v1312_v44 = vmul.f32 %v3575_v32, %v1310_v43 }
0x12a6   :  { %1316 = vrot.lane.b32.xlu1 %v1312_v44, %s3745_s15 }
0x1318   :  { %v4104_v48 = vpop.permute.xlu1 %1316 }
0x1319   :  { %3316 = vmatmul.mubr.msk.f32.vlgmr.msra.gmra.mxu1 %vm86_vm3, %v4104_v48 }
0x131a   :  { %3337 = vmatpush3.msra.mxu1 %v4102_v47  ;;  %3344 = vmatprep.mubr.msk.f32.mxu1 %vm3743_vm0, %v3742_v0 }
0x131b   :  { %3338 = vmatprep.subr.mxu1 %v3742_v0 }
0x131c   :  { %3339 = vmatpush3.msra.mxu1 %v4111_v49 }
0x131d   :  { %3340 = vmatprep.subr.mxu1 %v3742_v0 }
0x131e   :  { %3341 = vmatpush3.msra.mxu1 %v4120_v50 }
0x131f   :  { %3342 = vmatprep.subr.mxu1 %v3742_v0 }
0x1320   :  { %3343 = vmatpush3.msra.mxu1 %v4127_v51 }
0x1321   :  { %3345 = vmatmul.mubr.msk.f32.vlgmr.msra.gmra.mxu1 %vm86_vm3, %v3884_v28  ;;  %3358 = vmatprep.subr.mxu1 %v3742_v0  ;;  %v1569_v28 = vpop.f32.mrf.mxu0 }
0x1322   :  { %3359 = vmatpush3.msra.mxu1 %v4102_v47  ;;  %3366 = vmatprep.mubr.msk.f32.mxu1 %vm3743_vm0, %v3742_v0 }
0x1323   :  { %3360 = vmatprep.subr.mxu1 %v3742_v0 }
0x1324   :  { %3361 = vmatpush3.msra.mxu1 %v4111_v49 }
0x1325   :  { %3362 = vmatprep.subr.mxu1 %v3742_v0 }
0x1326   :  { %3363 = vmatpush3.msra.mxu1 %v4120_v50 }
0x1327   :  { %3364 = vmatprep.subr.mxu1 %v3742_v0 }
0x1328   :  { %3365 = vmatpush3.msra.mxu1 %v4127_v51 }
0x1329   :  { %3367 = vmatmul.mubr.msk.f32.vlgmr.msra.gmra.mxu1 %vm86_vm3, %v3925_v52  ;;  %3380 = vmatprep.subr.mxu1 %v3742_v0  ;;  %v3335_v52 = vpop.f32.mrf.mxu0 }
0x132a   :  { %3381 = vmatpush3.msra.mxu1 %v4102_v47  ;;  %3388 = vmatprep.mubr.msk.f32.mxu1 %vm3743_vm0, %v3742_v0 }
0x132b   :  { %3382 = vmatprep.subr.mxu1 %v3742_v0 }
0x132c   :  { %3383 = vmatpush3.msra.mxu1 %v4111_v49 }
0x132d   :  { %3384 = vmatprep.subr.mxu1 %v3742_v0 }
0x132e   :  { %3385 = vmatpush3.msra.mxu1 %v4120_v50 }
0x132f   :  { %3386 = vmatprep.subr.mxu1 %v3742_v0 }
0x1330   :  { %3387 = vmatpush3.msra.mxu1 %v4127_v51 }
0x1331   :  { %3389 = vmatmul.mubr.msk.f32.vlgmr.msra.gmra.mxu1 %vm86_vm3, %v3955_v17  ;;  %3402 = vmatprep.subr.mxu1 %v3742_v0 }
0x1332   :  { %3403 = vmatpush3.msra.mxu1 %v4102_v47  ;;  %3410 = vmatprep.mubr.msk.f32.mxu1 %vm3743_vm0, %v3742_v0 }
0x1333   :  { %3404 = vmatprep.subr.mxu1 %v3742_v0 }
0x1334   :  { %3405 = vmatpush3.msra.mxu1 %v4111_v49 }
0x1335   :  { %3406 = vmatprep.subr.mxu1 %v3742_v0 }
0x1336   :  { %3407 = vmatpush3.msra.mxu1 %v4120_v50 }
0x1337   :  { %3408 = vmatprep.subr.mxu1 %v3742_v0 }
0x1338   :  { %3409 = vmatpush3.msra.mxu1 %v4127_v51 }
0x1339   :  { %3411 = vmatmul.mubr.msk.f32.vlgmr.msra.gmra.mxu1 %vm86_vm3, %v3985_v39  ;;  %3424 = vmatprep.subr.mxu1 %v3742_v0 }
0x133a   :  { %3425 = vmatpush3.msra.mxu1 %v4102_v47  ;;  %3432 = vmatprep.mubr.msk.f32.mxu1 %vm3743_vm0, %v3742_v0 }
0x133b   :  { %3426 = vmatprep.subr.mxu1 %v3742_v0 }
0x133c   :  { %3427 = vmatpush3.msra.mxu1 %v4111_v49 }
0x133d   :  { %3428 = vmatprep.subr.mxu1 %v3742_v0 }
0x133e   :  { %3429 = vmatpush3.msra.mxu1 %v4120_v50 }
0x133f   :  { %3430 = vmatprep.subr.mxu1 %v3742_v0 }
0x1340   :  { %3431 = vmatpush3.msra.mxu1 %v4127_v51 }
0x1341   :  { %3433 = vmatmul.mubr.msk.f32.vlgmr.msra.gmra.mxu1 %vm86_vm3, %v4015_v61  ;;  %3446 = vmatprep.subr.mxu1 %v3742_v0 }
0x1342   :  { %3447 = vmatpush3.msra.mxu1 %v4102_v47  ;;  %3454 = vmatprep.mubr.msk.f32.mxu1 %vm3743_vm0, %v3742_v0 }
0x1343   :  { %3448 = vmatprep.subr.mxu1 %v3742_v0 }
0x1344   :  { %3449 = vmatpush3.msra.mxu1 %v4111_v49 }
0x1345   :  { %3450 = vmatprep.subr.mxu1 %v3742_v0 }
0x1346   :  { %3451 = vmatpush3.msra.mxu1 %v4120_v50 }
0x1347   :  { %3452 = vmatprep.subr.mxu1 %v3742_v0 }
0x1348   :  { %3453 = vmatpush3.msra.mxu1 %v4127_v51 }
0x1349   :  { %3455 = vmatmul.mubr.msk.f32.vlgmr.msra.gmra.mxu1 %vm86_vm3, %v4045_v2  ;;  %3468 = vmatprep.subr.mxu1 %v3742_v0 }
0x134a   :  { %3469 = vmatpush3.msra.mxu1 %v4102_v47  ;;  %3476 = vmatprep.mubr.msk.f32.mxu1 %vm3743_vm0, %v3742_v0 }
0x134b   :  { %3470 = vmatprep.subr.mxu1 %v3742_v0 }
0x134c   :  { %3471 = vmatpush3.msra.mxu1 %v4111_v49 }
0x134d   :  { %3472 = vmatprep.subr.mxu1 %v3742_v0 }
0x134e   :  { %3473 = vmatpush3.msra.mxu1 %v4120_v50 }
0x134f   :  { %3474 = vmatprep.subr.mxu1 %v3742_v0 }
0x1350   :  { %3475 = vmatpush3.msra.mxu1 %v4127_v51 }
0x1351   :  { %3477 = vmatmul.mubr.msk.f32.vlgmr.msra.gmra.mxu1 %vm86_vm3, %v4104_v48  ;;  %3490 = vmatprep.subr.mxu1 %v3742_v0 }
0x1352   :  { %3491 = vmatpush3.msra.mxu1 %v4102_v47  ;;  %3498 = vmatprep.mubr.msk.f32.mxu1 %vm3743_vm0, %v3742_v0 }
0x1353   :  { %3492 = vmatprep.subr.mxu1 %v3742_v0 }
0x1354   :  { %3493 = vmatpush3.msra.mxu1 %v4111_v49 }
0x1355   :  { %3494 = vmatprep.subr.mxu1 %v3742_v0 }
0x1356   :  { %3495 = vmatpush3.msra.mxu1 %v4120_v50 }
0x1357   :  { %3496 = vmatprep.subr.mxu1 %v3742_v0 }
0x1358   :  { %3497 = vmatpush3.msra.mxu1 %v4127_v51 }
0x13d9   :  { %v4216_v17 = vpop.f32.mrf.mxu1 }
0x13db   :  { %v3317_v39 = vpop.f32.mrf.mxu1 }
0x13e1   :  { %v1639_v54 = vpop.f32.mrf.mxu1 }
0x13e2   :  { %v1640_v55 = vadd.f32 %v1639_v54, %v1569_v28 }
0x13e3   :  { %v3346_v56 = vpop.f32.mrf.mxu1 }
0x13e4   :  { %v1643_v57 = vadd.f32 %v4221_v53, %v1640_v55 }
0x13e6   :  { %3578 = vtanh.f32 %v1643_v57  ;;  %v3008_v15 = vmul.f32 -1.442695, %v1643_v57 }
0x13e8   :  { %3580 = vpow2.f32 %v3008_v15 }
0x13e9   :  { %v1809_v58 = vpop.f32.mrf.mxu1 }
0x13eb   :  { %v3368_v59 = vpop.f32.mrf.mxu1 }
0x13f1   :  { %v4224_v60 = vpop.f32.mrf.mxu1 }
0x13f3   :  { %v3579_v61 = vpop.eup %3578  ;;  %v3390_v62 = vpop.f32.mrf.mxu1 }
0x13f4   :  { %1653 = vrot.lane.b32.xlu0 %v3579_v61, %s3744_s14 }
0x13f5   :  { %v3581_v16 = vpop.eup %3580 }
0x13f6   :  { %v1647_v18 = vadd.f32 1.0, %v3581_v16 }
0x13f8   :  { %3582 = vrcp.f32 %v1647_v18 }
0x13f9   :  { %v4227_v63 = vpop.f32.mrf.mxu1 }
0x13fb   :  { %v3412_v5 = vpop.f32.mrf.mxu1 }
0x1401   :  { %v4229_v8 = vpop.f32.mrf.mxu1 }
0x1403   :  { %v3434_v9 = vpop.f32.mrf.mxu1 }
0x1405   :  { %v3583_v19 = vpop.eup %3582 }
0x1406   :  { %v1651_v22 = vmul.f32 0.0, %v3583_v19 }
0x1409   :  { %v4231_v11 = vpop.f32.mrf.mxu1 }
0x140b   :  { %v3456_v12 = vpop.f32.mrf.mxu1 }
0x1411   :  { %v4233_v13 = vpop.f32.mrf.mxu1 }
0x1413   :  { %v3478_v14 = vpop.f32.mrf.mxu1 }
0x1466   :  { %v1654_v20 = vpop.permute.xlu0 %1653 }
0x1467   :  { %v1656_v21 = vmul.f32 %v3583_v19, %v1654_v20 }
0x1469   :  { %1658 = vrot.lane.b32.xlu1 %v1656_v21, %s3745_s15 }
0x14db   :  { %v1659_v1 = vpop.permute.xlu1 %1658 }
0x14dc   :  { %v1661_v23 = vadd.f32 %v1659_v1, %v1651_v22 }
0x14de   :  { %3584 = vtanh.f32 %v1661_v23 }
0x14eb   :  { %v3585_v24 = vpop.eup %3584 }
0x14ec   :  { %1664 = vrot.lane.b32.xlu0 %v3585_v24, %s3744_s14 }
0x155e   :  { %v1665_v25 = vpop.permute.xlu0 %1664 }
0x155f   :  { %v1667_v2 = vmul.f32 %v3583_v19, %v1665_v25 }
0x1561   :  { %1669 = vrot.lane.b32.xlu1 %v1667_v2, %s3745_s15 }
0x15d3   :  { %v1670_v6 = vpop.permute.xlu1 %1669 }
0x15d4   :  { %3356 = vmatmul.mubr.msk.f32.vlgmr.msra.gmra.mxu0 %vm86_vm3, %v1670_v6 }
0x15d5   :  { %3370 = vmatpush3.msra.mxu0 %v4065_v37  ;;  %3377 = vmatprep.mubr.msk.f32.mxu0 %vm3743_vm0, %v3742_v0 }
0x15d6   :  { %3371 = vmatprep.subr.mxu0 %v3742_v0 }
0x15d7   :  { %3372 = vmatpush3.msra.mxu0 %v4073_v40 }
0x15d8   :  { %3373 = vmatprep.subr.mxu0 %v3742_v0 }
0x15d9   :  { %3374 = vmatpush3.msra.mxu0 %v4077_v41 }
0x15da   :  { %3375 = vmatprep.subr.mxu0 %v3742_v0 }
0x15db   :  { %3376 = vmatpush3.msra.mxu0 %v4081_v42 }
0x15dc   :  { %3391 = vmatprep.subr.mxu0 %v3742_v0 }
0x1694   :  { %v1739_v7 = vpop.f32.mrf.mxu0 }
0x1695   :  { %v1810_v26 = vadd.f32 %v1809_v58, %v1739_v7 }
0x1696   :  { %v3357_v27 = vpop.f32.mrf.mxu0 }
0x1697   :  { %v1813_v29 = vadd.f32 %v4221_v53, %v1810_v26 }
0x1699   :  { %3586 = vtanh.f32 %v1813_v29  ;;  %v3011_v3 = vmul.f32 -1.442695, %v1813_v29 }
0x169b   :  { %3588 = vpow2.f32 %v3011_v3 }
0x16a6   :  { %v3587_v30 = vpop.eup %3586 }
0x16a7   :  { %1823 = vrot.lane.b32.xlu0 %v3587_v30, %s3744_s14 }
0x16a8   :  { %v3589_v31 = vpop.eup %3588 }
0x16a9   :  { %v1817_v32 = vadd.f32 1.0, %v3589_v31 }
0x16ab   :  { %3590 = vrcp.f32 %v1817_v32 }
0x16b8   :  { %v3591_v33 = vpop.eup %3590 }
0x16b9   :  { %v1821_v35 = vmul.f32 %v3591_v33, %v1661_v23 }
0x1719   :  { %v1824_v34 = vpop.permute.xlu0 %1823 }
0x171a   :  { %v1826_v4 = vmul.f32 %v3591_v33, %v1824_v34 }
0x171c   :  { %1828 = vrot.lane.b32.xlu1 %v1826_v4, %s3745_s15 }
0x178e   :  { %v1829_v10 = vpop.permute.xlu1 %1828 }
0x178f   :  { %v1831_v38 = vadd.f32 %v1829_v10, %v1821_v35 }
0x1791   :  { %3592 = vtanh.f32 %v1831_v38 }
0x179e   :  { %v3593_v43 = vpop.eup %3592 }
0x179f   :  { %1834 = vrot.lane.b32.xlu0 %v3593_v43, %s3744_s14 }
0x1811   :  { %v1835_v44 = vpop.permute.xlu0 %1834 }
0x1812   :  { %v1837_v46 = vmul.f32 %v3591_v33, %v1835_v44 }
0x1814   :  { %1839 = vrot.lane.b32.xlu1 %v1837_v46, %s3745_s15 }
0x1886   :  { %v1840_v47 = vpop.permute.xlu1 %1839 }
0x1887   :  { %3378 = vmatmul.mubr.msk.f32.vlgmr.msra.gmra.mxu0 %vm86_vm3, %v1840_v47 }
0x1888   :  { %3392 = vmatpush3.msra.mxu0 %v4065_v37  ;;  %3399 = vmatprep.mubr.msk.f32.mxu0 %vm3743_vm0, %v3742_v0 }
0x1889   :  { %3393 = vmatprep.subr.mxu0 %v3742_v0 }
0x188a   :  { %3394 = vmatpush3.msra.mxu0 %v4073_v40 }
0x188b   :  { %3395 = vmatprep.subr.mxu0 %v3742_v0 }
0x188c   :  { %3396 = vmatpush3.msra.mxu0 %v4077_v41 }
0x188d   :  { %3397 = vmatprep.subr.mxu0 %v3742_v0 }
0x188e   :  { %3398 = vmatpush3.msra.mxu0 %v4081_v42 }
0x188f   :  { %3413 = vmatprep.subr.mxu0 %v3742_v0 }
0x1947   :  { %v1909_v48 = vpop.f32.mrf.mxu0 }
0x1948   :  { %v1980_v49 = vadd.f32 %v4224_v60, %v1909_v48 }
0x1949   :  { %v3379_v50 = vpop.f32.mrf.mxu0 }
0x194a   :  { %v1983_v51 = vadd.f32 %v4221_v53, %v1980_v49 }
0x194c   :  { %3594 = vtanh.f32 %v1983_v51  ;;  %v3014_v52 = vmul.f32 -1.442695, %v1983_v51 }
0x194e   :  { %3596 = vpow2.f32 %v3014_v52 }
0x1959   :  { %v3595_v28 = vpop.eup %3594 }
0x195a   :  { %1993 = vrot.lane.b32.xlu0 %v3595_v28, %s3744_s14 }
0x195b   :  { %v3597_v39 = vpop.eup %3596 }
0x195c   :  { %v1987_v54 = vadd.f32 1.0, %v3597_v39 }
0x195e   :  { %3598 = vrcp.f32 %v1987_v54 }
0x196b   :  { %v3599_v55 = vpop.eup %3598 }
0x196c   :  { %v1991_v58 = vmul.f32 %v3599_v55, %v1831_v38 }
0x19cc   :  { %v1994_v56 = vpop.permute.xlu0 %1993 }
0x19cd   :  { %v1996_v57 = vmul.f32 %v3599_v55, %v1994_v56 }
0x19cf   :  { %1998 = vrot.lane.b32.xlu1 %v1996_v57, %s3745_s15 }
0x1a41   :  { %v1999_v59 = vpop.permute.xlu1 %1998 }
0x1a42   :  { %v2001_v60 = vadd.f32 %v1999_v59, %v1991_v58 }
0x1a44   :  { %3600 = vtanh.f32 %v2001_v60 }
0x1a51   :  { %v3601_v61 = vpop.eup %3600 }
0x1a52   :  { %2004 = vrot.lane.b32.xlu0 %v3601_v61, %s3744_s14 }
0x1ac4   :  { %v2005_v62 = vpop.permute.xlu0 %2004 }
0x1ac5   :  { %v2007_v5 = vmul.f32 %v3599_v55, %v2005_v62  ;;  %v3650_v62 = vld [vmem:[%s4380_s3] ss:$0 sm:$0xff] }
0x1ac7   :  { %2009 = vrot.lane.b32.xlu1 %v2007_v5, %s3745_s15 }
0x1b39   :  { %v2010_v9 = vpop.permute.xlu1 %2009 }
0x1b3a   :  { %3400 = vmatmul.mubr.msk.f32.vlgmr.msra.gmra.mxu0 %vm86_vm3, %v2010_v9 }
0x1b3b   :  { %3414 = vmatpush3.msra.mxu0 %v4065_v37  ;;  %3421 = vmatprep.mubr.msk.f32.mxu0 %vm3743_vm0, %v3742_v0 }
0x1b3c   :  { %3415 = vmatprep.subr.mxu0 %v3742_v0 }
0x1b3d   :  { %3416 = vmatpush3.msra.mxu0 %v4073_v40 }
0x1b3e   :  { %3417 = vmatprep.subr.mxu0 %v3742_v0 }
0x1b3f   :  { %3418 = vmatpush3.msra.mxu0 %v4077_v41 }
0x1b40   :  { %3419 = vmatprep.subr.mxu0 %v3742_v0 }
0x1b41   :  { %3420 = vmatpush3.msra.mxu0 %v4081_v42 }
0x1b42   :  { %3435 = vmatprep.subr.mxu0 %v3742_v0 }
0x1bfa   :  { %v2079_v12 = vpop.f32.mrf.mxu0 }
0x1bfb   :  { %v2150_v14 = vadd.f32 %v4227_v63, %v2079_v12 }
0x1bfc   :  { %v3401_v15 = vpop.f32.mrf.mxu0 }
0x1bfd   :  { %v2153_v16 = vadd.f32 %v4221_v53, %v2150_v14 }
0x1bff   :  { %3602 = vtanh.f32 %v2153_v16  ;;  %v3017_v19 = vmul.f32 -1.442695, %v2153_v16 }
0x1c01   :  { %3604 = vpow2.f32 %v3017_v19 }
0x1c0c   :  { %v3603_v18 = vpop.eup %3602 }
0x1c0d   :  { %2163 = vrot.lane.b32.xlu0 %v3603_v18, %s3744_s14 }
0x1c0e   :  { %v3605_v20 = vpop.eup %3604 }
0x1c0f   :  { %v2157_v21 = vadd.f32 1.0, %v3605_v20 }
0x1c11   :  { %3606 = vrcp.f32 %v2157_v21 }
0x1c1e   :  { %v3607_v22 = vpop.eup %3606 }
0x1c1f   :  { %v2161_v24 = vmul.f32 %v3607_v22, %v2001_v60 }
0x1c7f   :  { %v2164_v1 = vpop.permute.xlu0 %2163 }
0x1c80   :  { %v2166_v23 = vmul.f32 %v3607_v22, %v2164_v1 }
0x1c82   :  { %2168 = vrot.lane.b32.xlu1 %v2166_v23, %s3745_s15 }
0x1cf4   :  { %v2169_v25 = vpop.permute.xlu1 %2168 }
0x1cf5   :  { %v2171_v63 = vadd.f32 %v2169_v25, %v2161_v24 }
0x1cf7   :  { %3608 = vtanh.f32 %v2171_v63 }
0x1d04   :  { %v3609_v2 = vpop.eup %3608 }
0x1d05   :  { %2174 = vrot.lane.b32.xlu0 %v3609_v2, %s3744_s14 }
0x1d77   :  { %v2175_v6 = vpop.permute.xlu0 %2174 }
0x1d78   :  { %v2177_v7 = vmul.f32 %v3607_v22, %v2175_v6 }
0x1d7a   :  { %2179 = vrot.lane.b32.xlu1 %v2177_v7, %s3745_s15 }
0x1dec   :  { %v2180_v26 = vpop.permute.xlu1 %2179 }
0x1ded   :  { %3422 = vmatmul.mubr.msk.f32.vlgmr.msra.gmra.mxu0 %vm86_vm3, %v2180_v26 }
0x1dee   :  { %3436 = vmatpush3.msra.mxu0 %v4065_v37  ;;  %3443 = vmatprep.mubr.msk.f32.mxu0 %vm3743_vm0, %v3742_v0 }
0x1def   :  { %3437 = vmatprep.subr.mxu0 %v3742_v0 }
0x1df0   :  { %3438 = vmatpush3.msra.mxu0 %v4073_v40 }
0x1df1   :  { %3439 = vmatprep.subr.mxu0 %v3742_v0 }
0x1df2   :  { %3440 = vmatpush3.msra.mxu0 %v4077_v41 }
0x1df3   :  { %3441 = vmatprep.subr.mxu0 %v3742_v0 }
0x1df4   :  { %3442 = vmatpush3.msra.mxu0 %v4081_v42 }
0x1df5   :  { %3457 = vmatprep.subr.mxu0 %v3742_v0 }
0x1ead   :  { %v2249_v27 = vpop.f32.mrf.mxu0 }
0x1eae   :  { %v2320_v29 = vadd.f32 %v4229_v8, %v2249_v27 }
0x1eaf   :  { %v3423_v30 = vpop.f32.mrf.mxu0 }
0x1eb0   :  { %v2323_v3 = vadd.f32 %v4221_v53, %v2320_v29 }
0x1eb2   :  { %3610 = vtanh.f32 %v2323_v3  ;;  %v3020_v32 = vmul.f32 -1.442695, %v2323_v3 }
0x1eb4   :  { %3612 = vpow2.f32 %v3020_v32 }
0x1ebf   :  { %v3611_v31 = vpop.eup %3610 }
0x1ec0   :  { %2333 = vrot.lane.b32.xlu0 %v3611_v31, %s3744_s14 }
0x1ec1   :  { %v3613_v33 = vpop.eup %3612 }
0x1ec2   :  { %v2327_v34 = vadd.f32 1.0, %v3613_v33 }
0x1ec4   :  { %3614 = vrcp.f32 %v2327_v34 }
0x1ed1   :  { %v3615_v4 = vpop.eup %3614 }
0x1ed2   :  { %v2331_v38 = vmul.f32 %v3615_v4, %v2171_v63 }
0x1f32   :  { %v2334_v35 = vpop.permute.xlu0 %2333 }
0x1f33   :  { %v2336_v10 = vmul.f32 %v3615_v4, %v2334_v35 }
0x1f35   :  { %2338 = vrot.lane.b32.xlu1 %v2336_v10, %s3745_s15 }
0x1fa7   :  { %v2339_v43 = vpop.permute.xlu1 %2338 }
0x1fa8   :  { %v2341_v8 = vadd.f32 %v2339_v43, %v2331_v38 }
0x1faa   :  { %3616 = vtanh.f32 %v2341_v8 }
0x1fb7   :  { %v3617_v44 = vpop.eup %3616 }
0x1fb8   :  { %2344 = vrot.lane.b32.xlu0 %v3617_v44, %s3744_s14 }
0x202a   :  { %v2345_v46 = vpop.permute.xlu0 %2344 }
0x202b   :  { %v2347_v47 = vmul.f32 %v3615_v4, %v2345_v46 }
0x202d   :  { %2349 = vrot.lane.b32.xlu1 %v2347_v47, %s3745_s15 }
0x209f   :  { %v2350_v48 = vpop.permute.xlu1 %2349 }
0x20a0   :  { %3444 = vmatmul.mubr.msk.f32.vlgmr.msra.gmra.mxu0 %vm86_vm3, %v2350_v48 }
0x20a1   :  { %3458 = vmatpush3.msra.mxu0 %v4065_v37  ;;  %3465 = vmatprep.mubr.msk.f32.mxu0 %vm3743_vm0, %v3742_v0 }
0x20a2   :  { %3459 = vmatprep.subr.mxu0 %v3742_v0 }
0x20a3   :  { %3460 = vmatpush3.msra.mxu0 %v4073_v40 }
0x20a4   :  { %3461 = vmatprep.subr.mxu0 %v3742_v0 }
0x20a5   :  { %3462 = vmatpush3.msra.mxu0 %v4077_v41 }
0x20a6   :  { %3463 = vmatprep.subr.mxu0 %v3742_v0 }
0x20a7   :  { %3464 = vmatpush3.msra.mxu0 %v4081_v42 }
0x20a8   :  { %3479 = vmatprep.subr.mxu0 %v3742_v0 }
0x2160   :  { %v2419_v49 = vpop.f32.mrf.mxu0 }
0x2161   :  { %v2490_v50 = vadd.f32 %v4231_v11, %v2419_v49  ;;  %v1460_v11 = vadd.f32 %v4097_v45, %v4216_v17 }
0x2162   :  { %v3445_v51 = vpop.f32.mrf.mxu0 }
0x2163   :  { %v2493_v28 = vadd.f32 %v4221_v53, %v2490_v50  ;;  %v1463_v5 = vadd.f32 %v3650_v62, %v1460_v11 }
0x2165   :  { %3618 = vtanh.f32 %v2493_v28  ;;  %v3023_v39 = vmul.f32 -1.442695, %v2493_v28  ;;  %v3005_v14 = vmul.f32 -1.442695, %v1463_v5 }
0x2167   :  { %3620 = vpow2.f32 %v3023_v39 }
0x2172   :  { %v3619_v52 = vpop.eup %3618 }
0x2173   :  { %2503 = vrot.lane.b32.xlu0 %v3619_v52, %s3744_s14 }
0x2174   :  { %v3621_v54 = vpop.eup %3620 }
0x2175   :  { %v2497_v55 = vadd.f32 1.0, %v3621_v54 }
0x2177   :  { %3622 = vrcp.f32 %v2497_v55  ;;  %v2865_v55 = vld [vmem:[%s4384_s7 + $0x10] sm:$0xff] }
0x2184   :  { %v3623_v56 = vpop.eup %3622 }
0x2185   :  { %v2501_v59 = vmul.f32 %v3623_v56, %v2341_v8 }
0x21e5   :  { %v2504_v57 = vpop.permute.xlu0 %2503 }
0x21e6   :  { %v2506_v58 = vmul.f32 %v3623_v56, %v2504_v57  ;;  %v2863_v57 = vld [vmem:[%s4384_s7] sm:$0xff] }
0x21e8   :  { %2508 = vrot.lane.b32.xlu1 %v2506_v58, %s3745_s15 }
0x225a   :  { %v2509_v60 = vpop.permute.xlu1 %2508 }
0x225b   :  { %v2511_v61 = vadd.f32 %v2509_v60, %v2501_v59 }
0x225d   :  { %3624 = vtanh.f32 %v2511_v61 }
0x225e   :  { %3626 = vtanh.f32 %v1463_v5 }
0x225f   :  { %3628 = vpow2.f32 %v3005_v14 }
0x226a   :  { %v3625_v9 = vpop.eup %3624 }
0x226b   :  { %2514 = vrot.lane.b32.xlu0 %v3625_v9, %s3744_s14  ;;  %v3627_v12 = vpop.eup %3626 }
0x226c   :  { %v3629_v15 = vpop.eup %3628 }
0x226d   :  { %v1467_v45 = vadd.f32 1.0, %v3629_v15 }
0x226f   :  { %1473 = vrot.lane.b32.xlu0 %v3627_v12, %s3744_s14  ;;  %3630 = vrcp.f32 %v1467_v45 }
0x227c   :  { %v3631_v18 = vpop.eup %3630 }
0x227d   :  { %v1471_v22 = vmul.f32 %v3631_v18, %v4059_v36 }
0x22dd   :  { %v2515_v17 = vpop.permute.xlu0 %2514 }
0x22de   :  { %v2517_v16 = vmul.f32 %v3623_v56, %v2515_v17  ;;  %v2864_v56 = vld [vmem:[%s4384_s7 + $0x8] sm:$0xff] }
0x22e0   :  { %2519 = vrot.lane.b32.xlu1 %v2517_v16, %s3745_s15 }
0x22e1   :  { %v1474_v19 = vpop.permute.xlu0 %1473 }
0x22e2   :  { %v1476_v20 = vmul.f32 %v3631_v18, %v1474_v19 }
0x22e4   :  { %1478 = vrot.lane.b32.xlu0 %v1476_v20, %s3745_s15 }
0x2352   :  { %v2520_v21 = vpop.permute.xlu1 %2519 }
0x2353   :  { %3466 = vmatmul.mubr.msk.f32.vlgmr.msra.gmra.mxu0 %vm86_vm3, %v2520_v21 }
0x2354   :  { %3480 = vmatpush3.msra.mxu0 %v4065_v37  ;;  %3487 = vmatprep.mubr.msk.f32.mxu0 %vm3743_vm0, %v3742_v0 }
0x2355   :  { %3481 = vmatprep.subr.mxu0 %v3742_v0 }
0x2356   :  { %v1479_v1 = vpop.permute.xlu0 %1478  ;;  %3482 = vmatpush3.msra.mxu0 %v4073_v40 }
0x2357   :  { %v1481_v23 = vadd.f32 %v1479_v1, %v1471_v22  ;;  %3483 = vmatprep.subr.mxu0 %v3742_v0 }
0x2358   :  { %3484 = vmatpush3.msra.mxu0 %v4077_v41 }
0x2359   :  { %3632 = vtanh.f32 %v1481_v23  ;;  %3485 = vmatprep.subr.mxu0 %v3742_v0 }
0x235a   :  { %3486 = vmatpush3.msra.mxu0 %v4081_v42 }
0x235b   :  { %3501 = vmatprep.subr.mxu0 %v3742_v0 }
0x2366   :  { %v3633_v37 = vpop.eup %3632 }
0x2367   :  { %1484 = vrot.lane.b32.xlu0 %v3633_v37, %s3744_s14 }
0x23d9   :  { %v1485_v3 = vpop.permute.xlu0 %1484 }
0x23da   :  { %v1487_v31 = vmul.f32 %v3631_v18, %v1485_v3 }
0x2413   :  { %v2589_v36 = vpop.f32.mrf.mxu0 }
0x2414   :  { %v2660_v24 = vadd.f32 %v4233_v13, %v2589_v36 }
0x2415   :  { %v3467_v25 = vpop.f32.mrf.mxu0 }
0x2416   :  { %v2663_v40 = vadd.f32 %v4221_v53, %v2660_v24 }
0x2418   :  { %3634 = vtanh.f32 %v2663_v40  ;;  %v3026_v41 = vmul.f32 -1.442695, %v2663_v40 }
0x241a   :  { %3636 = vpow2.f32 %v3026_v41 }
0x2425   :  { %v3635_v63 = vpop.eup %3634 }
0x2426   :  { %2673 = vrot.lane.b32.xlu1 %v3635_v63, %s3744_s14 }
0x2427   :  { %v3637_v2 = vpop.eup %3636 }
0x2428   :  { %v2667_v6 = vadd.f32 1.0, %v3637_v2 }
0x242a   :  { %3638 = vrcp.f32 %v2667_v6 }
0x2437   :  { %v3639_v42 = vpop.eup %3638 }
0x2438   :  { %v2671_v27 = vmul.f32 %v3639_v42, %v2511_v61  ;;  %v3030_v61 = vld [vmem:[#allocation7] ss:$0 sm:$0xff] }
0x2498   :  { %v2674_v7 = vpop.permute.xlu1 %2673 }
0x2499   :  { %v2676_v26 = vmul.f32 %v3639_v42, %v2674_v7 }
0x249b   :  { %2678 = vrot.lane.b32.xlu1 %v2676_v26, %s3745_s15 }
0x250d   :  { %v2679_v29 = vpop.permute.xlu1 %2678 }
0x250e   :  { %v2681_v13 = vadd.f32 %v2679_v29, %v2671_v27 }
0x2510   :  { %3640 = vtanh.f32 %v2681_v13 }
0x251d   :  { %v3641_v30 = vpop.eup %3640 }
0x251e   :  { %2684 = vrot.lane.b32.xlu1 %v3641_v30, %s3744_s14 }
0x2522   :  { %2764 = vrot.lane.b32.xlu1 %v1487_v31, %s3745_s15 }
0x2590   :  { %v2685_v32 = vpop.permute.xlu1 %2684 }
0x2591   :  { %v2687_v33 = vmul.f32 %v3639_v42, %v2685_v32 }
0x2593   :  { %2689 = vrot.lane.b32.xlu0 %v2687_v33, %s3745_s15 }
0x2594   :  { %v2765_v34 = vpop.permute.xlu1 %2764 }
0x2595   :  { %3499 = vmatmul.mubr.msk.f32.vlgmr.msra.gmra.mxu1 %vm86_vm3, %v2765_v34 }
0x2605   :  { %v2690_v4 = vpop.permute.xlu0 %2689 }
0x2606   :  { %3488 = vmatmul.mubr.msk.f32.vlgmr.msra.gmra.mxu0 %vm86_vm3, %v2690_v4 }
0x2607   :  { %3509 = vmatprep.mubr.msk.f32.mxu0 %vm3743_vm0, %v3742_v0 }
0x2655   :  { %v2834_v35 = vpop.f32.mrf.mxu1 }
0x2657   :  { %v3500_v10 = vpop.f32.mrf.mxu1 }
0x26c6   :  { %v2759_v38 = vpop.f32.mrf.mxu0 }
0x26c7   :  { %v2835_v43 = vadd.f32 %v2834_v35, %v2759_v38 }
0x26c8   :  { %v3489_v8 = vpop.f32.mrf.mxu0 }
0x26c9   :  { %v2838_v44 = vadd.f32 %v4221_v53, %v2835_v43  ;;  %v2866_v53 = vld [vmem:[%s4384_s7 + $0x18] sm:$0xff]  ;;  %s3711_s7 = scalar_lea.vmem %s2958_s24, 32 }
0x26ca   :  { %3502 = vmatpush3.msra.mxu0 %v2866_v53  ;;  %p3712_p1 = scmp.ne.s32.totalorder %s2958_s24, %s3711_s7  ;;  %p3717_p3 = scmp.lt.s32.totalorder %s3711_s7, %s3711_s7 }
0x26cb   :  { %3642 = vtanh.f32 %v2838_v44  ;;  %v3029_v47 = vmul.f32 -1.442695, %v2838_v44  ;;  %3503 = vmatprep.subr.mxu0 %v3742_v0 }
0x26cc   :  { %3504 = vmatpush3.msra.mxu0 %v2865_v55  ;;  %p3718_p4 = por %p3717_p3, %p3716_p2 }
0x26cd   :  { %3644 = vpow2.f32 %v3029_v47  ;;  %3505 = vmatprep.subr.mxu0 %v3742_v0 }
0x26ce   :  { %3506 = vmatpush3.msra.mxu0 %v2864_v56  ;;  %p3719_p5 = pnand %p3718_p4, %p3712_p1 }
0x26cf   :  { %3507 = vmatprep.subr.mxu0 %v3742_v0 }
0x26d0   :  { %3508 = vmatpush3.msra.mxu0 %v2863_v57 }
0x26d8   :  { %v3643_v46 = vpop.eup %3642 }
0x26d9   :  { %2848 = vrot.lane.b32.xlu0 %v3643_v46, %s3744_s14 }
0x26da   :  { %v3645_v48 = vpop.eup %3644 }
0x26db   :  { %v2842_v49 = vadd.f32 1.0, %v3645_v48 }
0x26dd   :  { %3646 = vrcp.f32 %v2842_v49 }
0x26ea   :  { %v3647_v50 = vpop.eup %3646 }
0x26eb   :  { %v2846_v52 = vmul.f32 %v3647_v50, %v2681_v13 }
0x274b   :  { %v2849_v51 = vpop.permute.xlu0 %2848 }
0x274c   :  { %v2851_v28 = vmul.f32 %v3647_v50, %v2849_v51 }
0x274e   :  { %2853 = vrot.lane.b32.xlu1 %v2851_v28, %s3745_s15 }
0x27c0   :  { %v2854_v39 = vpop.permute.xlu1 %2853 }
0x27c1   :  { %v2856_v54 = vadd.f32 %v2854_v39, %v2846_v52 }
0x27c3   :  { %3648 = vtanh.f32 %v2856_v54 }
0x27d0   :  { %v3649_v58 = vpop.eup %3648 }
0x27d1   :  { %2859 = vrot.lane.b32.xlu0 %v3649_v58, %s3744_s14 }
0x2843   :  { %v2860_v11 = vpop.permute.xlu0 %2859 }
0x2844   :  { %v2862_v59 = vmul.f32 %v3647_v50, %v2860_v11 }
0x2846   :  { %2875 = vrot.lane.b32.xlu1 %v2862_v59, %s3745_s15 }
0x28b8   :  { %v2876_v60 = vpop.permute.xlu1 %2875 }
0x28b9   :  { %3510 = vmatmul.mubr.msk.f32.vlgmr.msra.gmra.mxu0 %vm86_vm3, %v2876_v60 }
0x2979   :  { %v2945_v62 = vpop.f32.mrf.mxu0 }
0x297a   :  { %v2946_v5 = vadd.f32 %v3030_v61, %v2945_v62 }
0x297b   :  { %v3511_v9 = vpop.f32.mrf.mxu0 }
0x297c   :  { %2950 = vst.msk [vmem:[#allocation8] sm:$0x3] %vm2949_vm4, %v2946_v5 }
0x297d   :  { %3722 = shalt.err (!%p3719_p5)
}
0x297e   :  { %2960 = dma.vmem_to_hbm [thread:$0]  %s2958_s24, 32, %s4386_s9, [#allocation4]  }
0x297f   :  { %3735 = dma.done.wait [#allocation4], 32  }
0x2980   :  { %3736 = vsyncadd [#allocation4], 4294967264 }
0x2981   :  { %2964 = vsyncpa [#allocation3], 1 }
0x2982   :  { %2965 = vsyncpa [#allocation6], 1 }
0x2983   :  { %2966 = vsyncpa [#allocation4], 1 }

</bundles_post_ra>
